<compile_context>
chip_gen: v5e
topology: v5e:2x2
jax: 0.10.0
libtpu: 0.0.40
codegen_flags: <defaults>
</compile_context>

<pallas_src>
import functools

import jax
import jax.numpy as jnp
from jax import lax
from jax.experimental import pallas as pl
from jax.experimental.pallas import tpu as pltpu


def _rnn_classifier_kernel(ids_ref, len_ref, emb_ref,
                           wih_f_ref, whh_f_ref, b_f_ref,
                           wih_b_ref, whh_b_ref, b_b_ref,
                           wd_ref, bd_ref,
                           logits_ref, hidden_ref,
                           *, B, T, V, E, H, C):
    f32 = jnp.float32

    # ---- One-time fused parameter prep on the MXU --------------------------
    # Fold the embedding table into the input->gate projection:
    #   gx_t = onehot(ids_t) @ (emb @ W_ih^T)  ==  emb[ids_t] @ W_ih^T
    # (exact: the one-hot matmul is a pure row-select). This fuses the
    # embedding lookup with the input projection into one lane-dense matmul
    # per step and avoids materializing (B, T, E) activations in HBM.
    emb = emb_ref[...]                                              # (V, E)
    ef = jnp.dot(emb, wih_f_ref[...], preferred_element_type=f32)   # (V, 4H)
    eb = jnp.dot(emb, wih_b_ref[...], preferred_element_type=f32)   # (V, 4H)
    whh_f = whh_f_ref[...]                                          # (H, 4H)
    whh_b = whh_b_ref[...]
    b_f = b_f_ref[...]                                              # (1, 4H)
    b_b = b_b_ref[...]
    lens = len_ref[...]                                             # (B, 1) int32

    # Hoisted loop-invariant broadcasts.
    vocab_iota = lax.broadcasted_iota(jnp.int32, (B, V), 1)         # (B, V)
    zeros = jnp.zeros((B, H), f32)

    # TODO(synk): nn.Dropout on the embedding is stochastic train-time only;
    # this kernel implements the inference forward (dropout == identity).

    def lstm_step(t, h, c, e_w, whh, bias):
        ids_t = ids_ref[t]                                          # (B, 1) int32
        onehot = (ids_t == vocab_iota).astype(f32)                  # (B, V)
        gates = (jnp.dot(onehot, e_w, preferred_element_type=f32)
                 + jnp.dot(h, whh, preferred_element_type=f32)
                 + bias)                                            # (B, 4H)
        i = jax.nn.sigmoid(gates[:, 0 * H:1 * H])                   # PyTorch gate
        f = jax.nn.sigmoid(gates[:, 1 * H:2 * H])                   # order i,f,g,o
        g = jnp.tanh(gates[:, 2 * H:3 * H])
        o = jax.nn.sigmoid(gates[:, 3 * H:4 * H])
        c_new = f * c + i * g
        h_new = o * jnp.tanh(c_new)
        valid = t < lens                                            # (B, 1) bool
        return jnp.where(valid, h_new, h), jnp.where(valid, c_new, c)

    # Forward direction: t = 0 .. T-1.
    def fwd_body(t, carry):
        h, c = carry
        return lstm_step(t, h, c, ef, whh_f, b_f)

    h_f, _ = lax.fori_loop(0, T, fwd_body, (zeros, zeros), unroll=True)

    # Backward direction: t = T-1 .. 0 (padding steps masked out, exactly as
    # pack_padded_sequence + bidirectional LSTM does).
    def bwd_body(s, carry):
        h, c = carry
        return lstm_step(T - 1 - s, h, c, eb, whh_b, b_b)

    h_b, _ = lax.fori_loop(0, T, bwd_body, (zeros, zeros), unroll=True)

    # hidden = cat(hidden[-2], hidden[-1]) == [forward_final, backward_final]
    hidden = jnp.concatenate([h_f, h_b], axis=1)                    # (B, 2H)
    hidden_ref[...] = hidden.astype(hidden_ref.dtype)
    logits_ref[...] = (jnp.dot(hidden, wd_ref[...], preferred_element_type=f32)
                       + bd_ref[...]).astype(logits_ref.dtype)


def rnn_classifier_forward(ids, seq_len, params):
    """ids: (B, T) int32 token ids; seq_len: (B,) valid lengths.

    params holds PyTorch-layout weights:
      embedding (V, E); w_ih_* (4H, E); w_hh_* (4H, H); b_ih_*/b_hh_* (4H,);
      dense_w (C, 2H); dense_b (C,).   Returns (logits (B, C), hidden (B, 2H)).
    """
    B, T = ids.shape
    V, E = params["embedding"].shape
    H = params["w_hh_f"].shape[1]
    C = params["dense_w"].shape[0]

    # Cheap parameter-sized layout prep: transpose torch matrices so every
    # in-kernel matmul is (rows, K) @ (K, N) with a lane-dense N; sum the two
    # LSTM bias vectors (mathematically exact). ids go time-major so the time
    # loop indexes the leading (untiled) ref axis.
    ids_tm = jnp.transpose(ids.astype(jnp.int32))[:, :, None]        # (T, B, 1)
    lens = seq_len.astype(jnp.int32).reshape(B, 1)
    emb = params["embedding"].astype(jnp.float32)
    wih_f = jnp.transpose(params["w_ih_f"]).astype(jnp.float32)      # (E, 4H)
    whh_f = jnp.transpose(params["w_hh_f"]).astype(jnp.float32)      # (H, 4H)
    b_f = (params["b_ih_f"] + params["b_hh_f"]).reshape(1, 4 * H).astype(jnp.float32)
    wih_b = jnp.transpose(params["w_ih_b"]).astype(jnp.float32)
    whh_b = jnp.transpose(params["w_hh_b"]).astype(jnp.float32)
    b_b = (params["b_ih_b"] + params["b_hh_b"]).reshape(1, 4 * H).astype(jnp.float32)
    wd = jnp.transpose(params["dense_w"]).astype(jnp.float32)        # (2H, C)
    bd = params["dense_b"].reshape(1, C).astype(jnp.float32)

    kernel = functools.partial(_rnn_classifier_kernel,
                               B=B, T=T, V=V, E=E, H=H, C=C)

    grid_spec = pltpu.PrefetchScalarGridSpec(
        num_scalar_prefetch=0,
        # Tiny demo batch -> one grid step; for production-sized batches tile
        # B across a "parallel" grid axis (keeps both v7x TensorCores busy).
        grid=(1,),
        in_specs=[
            pl.BlockSpec((T, B, 1), lambda i: (0, 0, 0)),     # ids, time-major
            pl.BlockSpec((B, 1), lambda i: (0, 0)),           # seq lengths
            pl.BlockSpec((V, E), lambda i: (0, 0)),           # embedding table
            pl.BlockSpec((E, 4 * H), lambda i: (0, 0)),       # W_ih forward^T
            pl.BlockSpec((H, 4 * H), lambda i: (0, 0)),       # W_hh forward^T
            pl.BlockSpec((1, 4 * H), lambda i: (0, 0)),       # bias forward
            pl.BlockSpec((E, 4 * H), lambda i: (0, 0)),       # W_ih backward^T
            pl.BlockSpec((H, 4 * H), lambda i: (0, 0)),       # W_hh backward^T
            pl.BlockSpec((1, 4 * H), lambda i: (0, 0)),       # bias backward
            pl.BlockSpec((2 * H, C), lambda i: (0, 0)),       # dense W^T
            pl.BlockSpec((1, C), lambda i: (0, 0)),           # dense bias
        ],
        out_specs=[
            pl.BlockSpec((B, C), lambda i: (0, 0)),           # logits
            pl.BlockSpec((B, 2 * H), lambda i: (0, 0)),       # hidden
        ],
    )

    return pl.pallas_call(
        kernel,
        out_shape=(jax.ShapeDtypeStruct((B, C), jnp.float32),
                   jax.ShapeDtypeStruct((B, 2 * H), jnp.float32)),
        grid_spec=grid_spec,
        compiler_params=pltpu.CompilerParams(
            dimension_semantics=("arbitrary",)),
    )(ids_tm, lens, emb, wih_f, whh_f, b_f, wih_b, whh_b, b_b, wd, bd)


def _reference(ids, seq_len, params):
    """Pure-JAX reference matching the PyTorch forward (inference mode)."""
    x = params["embedding"][ids]                                     # (B, T, E)
    B, T, _ = x.shape
    H = params["w_hh_f"].shape[1]

    def run(w_ih, w_hh, b_ih, b_hh, time_order):
        h = jnp.zeros((B, H), jnp.float32)
        c = jnp.zeros((B, H), jnp.float32)
        for t in time_order:
            gates = x[:, t] @ w_ih.T + b_ih + h @ w_hh.T + b_hh
            i, f, g, o = jnp.split(gates, 4, axis=-1)
            i, f, o = jax.nn.sigmoid(i), jax.nn.sigmoid(f), jax.nn.sigmoid(o)
            g = jnp.tanh(g)
            c_new = f * c + i * g
            h_new = o * jnp.tanh(c_new)
            valid = (t < seq_len)[:, None]
            h = jnp.where(valid, h_new, h)
            c = jnp.where(valid, c_new, c)
        return h

    h_f = run(params["w_ih_f"], params["w_hh_f"],
              params["b_ih_f"], params["b_hh_f"], range(T))
    h_b = run(params["w_ih_b"], params["w_hh_b"],
              params["b_ih_b"], params["b_hh_b"], range(T - 1, -1, -1))
    hidden = jnp.concatenate([h_f, h_b], axis=1)
    logits = hidden @ params["dense_w"].T + params["dense_b"]
    return logits, hidden


if __name__ == "__main__":
    B, T = 2, 8           # batch, max sequence length
    V, E = 16, 32         # vocab size (index 0 = <PADDING>), embedding dim
    H, C = 32, 4          # rnn hidden size per direction, num classes

    key = jax.random.PRNGKey(0)
    keys = jax.random.split(key, 12)

    seq_len = jnp.array([8, 5], dtype=jnp.int32)
    ids = jax.random.randint(keys[0], (B, T), 1, V, dtype=jnp.int32)
    pos = jnp.arange(T)[None, :]
    ids = jnp.where(pos < seq_len[:, None], ids, 0)   # pad with <PADDING> id 0

    def rand(k, shape, scale=0.2):
        return scale * jax.random.normal(k, shape, dtype=jnp.float32)

    emb = rand(keys[1], (V, E), 0.5).at[0].set(0.0)   # padding row zeroed
    params = dict(
        embedding=emb,
        w_ih_f=rand(keys[2], (4 * H, E)), w_hh_f=rand(keys[3], (4 * H, H)),
        b_ih_f=rand(keys[4], (4 * H,)),   b_hh_f=rand(keys[5], (4 * H,)),
        w_ih_b=rand(keys[6], (4 * H, E)), w_hh_b=rand(keys[7], (4 * H, H)),
        b_ih_b=rand(keys[8], (4 * H,)),   b_hh_b=rand(keys[9], (4 * H,)),
        dense_w=rand(keys[10], (C, 2 * H)), dense_b=rand(keys[11], (C,)),
    )

    logits, hidden = rnn_classifier_forward(ids, seq_len, params)
    logits, hidden = jax.block_until_ready((logits, hidden))

    ref_logits, ref_hidden = _reference(ids, seq_len, params)
    assert logits.shape == (B, C) and hidden.shape == (B, 2 * H)
    assert jnp.allclose(hidden, ref_hidden, atol=1e-4, rtol=1e-4)
    assert jnp.allclose(logits, ref_logits, atol=1e-4, rtol=1e-4)

    print("KERNEL_OK")
</pallas_src>

<mosaic_0001>
module attributes {stable_mosaic.version = 11 : i64} {
  func.func @_rnn_classifier_kernel(%arg0: i32, %arg1: memref<8x2x1xi32, #tpu.memory_space<vmem>>, %arg2: memref<2x1xi32, #tpu.memory_space<vmem>>, %arg3: memref<16x32xf32, #tpu.memory_space<vmem>>, %arg4: memref<32x128xf32, #tpu.memory_space<vmem>>, %arg5: memref<32x128xf32, #tpu.memory_space<vmem>>, %arg6: memref<1x128xf32, #tpu.memory_space<vmem>>, %arg7: memref<32x128xf32, #tpu.memory_space<vmem>>, %arg8: memref<32x128xf32, #tpu.memory_space<vmem>>, %arg9: memref<1x128xf32, #tpu.memory_space<vmem>>, %arg10: memref<64x4xf32, #tpu.memory_space<vmem>>, %arg11: memref<1x4xf32, #tpu.memory_space<vmem>>, %arg12: memref<2x4xf32, #tpu.memory_space<vmem>>, %arg13: memref<2x64xf32, #tpu.memory_space<vmem>>) attributes {dimension_semantics = [#tpu.dimension_semantics<arbitrary>], iteration_bounds = array<i64: 1>, scalar_prefetch = 0 : i64, scratch_operands = 0 : i64, tpu.core_type = #tpu.core_type<tc>, window_params = [{pipeline_mode = #tpu.pipeline_mode<synchronous>, transform_indices = @transform_0, window_bounds = array<i64: 8, 2, 1>}, {pipeline_mode = #tpu.pipeline_mode<synchronous>, transform_indices = @transform_1, window_bounds = array<i64: 2, 1>}, {pipeline_mode = #tpu.pipeline_mode<synchronous>, transform_indices = @transform_2, window_bounds = array<i64: 16, 32>}, {pipeline_mode = #tpu.pipeline_mode<synchronous>, transform_indices = @transform_3, window_bounds = array<i64: 32, 128>}, {pipeline_mode = #tpu.pipeline_mode<synchronous>, transform_indices = @transform_4, window_bounds = array<i64: 32, 128>}, {pipeline_mode = #tpu.pipeline_mode<synchronous>, transform_indices = @transform_5, window_bounds = array<i64: 1, 128>}, {pipeline_mode = #tpu.pipeline_mode<synchronous>, transform_indices = @transform_6, window_bounds = array<i64: 32, 128>}, {pipeline_mode = #tpu.pipeline_mode<synchronous>, transform_indices = @transform_7, window_bounds = array<i64: 32, 128>}, {pipeline_mode = #tpu.pipeline_mode<synchronous>, transform_indices = @transform_8, window_bounds = array<i64: 1, 128>}, {pipeline_mode = #tpu.pipeline_mode<synchronous>, transform_indices = @transform_9, window_bounds = array<i64: 64, 4>}, {pipeline_mode = #tpu.pipeline_mode<synchronous>, transform_indices = @transform_10, window_bounds = array<i64: 1, 4>}, {pipeline_mode = #tpu.pipeline_mode<synchronous>, transform_indices = @transform_11, window_bounds = array<i64: 2, 4>}, {pipeline_mode = #tpu.pipeline_mode<synchronous>, transform_indices = @transform_12, window_bounds = array<i64: 2, 64>}]} {
    %c0 = arith.constant 0 : index
    %c0_0 = arith.constant 0 : index
    %0 = vector.load %arg3[%c0, %c0_0] : memref<16x32xf32, #tpu.memory_space<vmem>>, vector<16x32xf32>
    %c0_1 = arith.constant 0 : index
    %c0_2 = arith.constant 0 : index
    %1 = vector.load %arg4[%c0_1, %c0_2] : memref<32x128xf32, #tpu.memory_space<vmem>>, vector<32x128xf32>
    %cst = arith.constant dense<0.000000e+00> : vector<16x128xf32>
    %2 = tpu.matmul %0, %1, %cst {dimension_numbers = #tpu.dot_dimension_numbers<[1], [0], [0], [1], [0, 0, 1, 1], [], []>} : vector<16x32xf32>, vector<32x128xf32>, vector<16x128xf32> -> vector<16x128xf32>
    %c0_3 = arith.constant 0 : index
    %c0_4 = arith.constant 0 : index
    %3 = vector.load %arg7[%c0_3, %c0_4] : memref<32x128xf32, #tpu.memory_space<vmem>>, vector<32x128xf32>
    %cst_5 = arith.constant dense<0.000000e+00> : vector<16x128xf32>
    %4 = tpu.matmul %0, %3, %cst_5 {dimension_numbers = #tpu.dot_dimension_numbers<[1], [0], [0], [1], [0, 0, 1, 1], [], []>} : vector<16x32xf32>, vector<32x128xf32>, vector<16x128xf32> -> vector<16x128xf32>
    %c0_6 = arith.constant 0 : index
    %c0_7 = arith.constant 0 : index
    %5 = vector.load %arg5[%c0_6, %c0_7] : memref<32x128xf32, #tpu.memory_space<vmem>>, vector<32x128xf32>
    %c0_8 = arith.constant 0 : index
    %c0_9 = arith.constant 0 : index
    %6 = vector.load %arg8[%c0_8, %c0_9] : memref<32x128xf32, #tpu.memory_space<vmem>>, vector<32x128xf32>
    %c0_10 = arith.constant 0 : index
    %c0_11 = arith.constant 0 : index
    %7 = vector.load %arg6[%c0_10, %c0_11] : memref<1x128xf32, #tpu.memory_space<vmem>>, vector<1x128xf32>
    %c0_12 = arith.constant 0 : index
    %c0_13 = arith.constant 0 : index
    %8 = vector.load %arg9[%c0_12, %c0_13] : memref<1x128xf32, #tpu.memory_space<vmem>>, vector<1x128xf32>
    %c0_14 = arith.constant 0 : index
    %c0_15 = arith.constant 0 : index
    %9 = vector.load %arg2[%c0_14, %c0_15] : memref<2x1xi32, #tpu.memory_space<vmem>>, vector<2x1xi32>
    %10 = tpu.iota {dimensions = array<i32: 1>} : vector<2x16xi32>
    %cst_16 = arith.constant 0.000000e+00 : f32
    %11 = vector.broadcast %cst_16 : f32 to vector<2x32xf32>
    %c0_i32 = arith.constant 0 : i32
    %12 = arith.index_cast %c0_i32 : i32 to index
    %c0_17 = arith.constant 0 : index
    %c0_18 = arith.constant 0 : index
    %13 = vector.load %arg1[%12, %c0_17, %c0_18] : memref<8x2x1xi32, #tpu.memory_space<vmem>>, vector<1x2x1xi32>
    %14 = vector.shape_cast %13 : vector<1x2x1xi32> to vector<2x1xi32>
    %15 = vector.broadcast %14 : vector<2x1xi32> to vector<2x16xi32>
    %16 = arith.cmpi eq, %15, %10 : vector<2x16xi32>
    %17 = arith.extui %16 : vector<2x16xi1> to vector<2x16xi32>
    %18 = arith.sitofp %17 : vector<2x16xi32> to vector<2x16xf32>
    %cst_19 = arith.constant dense<0.000000e+00> : vector<2x128xf32>
    %19 = tpu.matmul %18, %2, %cst_19 {dimension_numbers = #tpu.dot_dimension_numbers<[1], [0], [0], [1], [0, 0, 1, 1], [], []>} : vector<2x16xf32>, vector<16x128xf32>, vector<2x128xf32> -> vector<2x128xf32>
    %cst_20 = arith.constant dense<0.000000e+00> : vector<2x128xf32>
    %20 = tpu.matmul %11, %5, %cst_20 {dimension_numbers = #tpu.dot_dimension_numbers<[1], [0], [0], [1], [0, 0, 1, 1], [], []>} : vector<2x32xf32>, vector<32x128xf32>, vector<2x128xf32> -> vector<2x128xf32>
    %21 = arith.addf %19, %20 : vector<2x128xf32>
    %22 = vector.broadcast %7 : vector<1x128xf32> to vector<2x128xf32>
    %23 = arith.addf %21, %22 : vector<2x128xf32>
    %24 = vector.extract_strided_slice %23 {offsets = [0, 0], sizes = [2, 32], strides = [1, 1]} : vector<2x128xf32> to vector<2x32xf32>
    %25 = arith.negf %24 : vector<2x32xf32>
    %26 = math.exp %25 : vector<2x32xf32>
    %cst_21 = arith.constant 1.000000e+00 : f32
    %27 = vector.broadcast %cst_21 : f32 to vector<2x32xf32>
    %28 = arith.addf %27, %26 : vector<2x32xf32>
    %29 = arith.divf %27, %28 : vector<2x32xf32>
    %30 = vector.extract_strided_slice %23 {offsets = [0, 32], sizes = [2, 32], strides = [1, 1]} : vector<2x128xf32> to vector<2x32xf32>
    %31 = arith.negf %30 : vector<2x32xf32>
    %32 = math.exp %31 : vector<2x32xf32>
    %cst_22 = arith.constant 1.000000e+00 : f32
    %33 = vector.broadcast %cst_22 : f32 to vector<2x32xf32>
    %34 = arith.addf %33, %32 : vector<2x32xf32>
    %35 = arith.divf %33, %34 : vector<2x32xf32>
    %36 = vector.extract_strided_slice %23 {offsets = [0, 64], sizes = [2, 32], strides = [1, 1]} : vector<2x128xf32> to vector<2x32xf32>
    %37 = math.tanh %36 : vector<2x32xf32>
    %38 = vector.extract_strided_slice %23 {offsets = [0, 96], sizes = [2, 32], strides = [1, 1]} : vector<2x128xf32> to vector<2x32xf32>
    %39 = arith.negf %38 : vector<2x32xf32>
    %40 = math.exp %39 : vector<2x32xf32>
    %cst_23 = arith.constant 1.000000e+00 : f32
    %41 = vector.broadcast %cst_23 : f32 to vector<2x32xf32>
    %42 = arith.addf %41, %40 : vector<2x32xf32>
    %43 = arith.divf %41, %42 : vector<2x32xf32>
    %44 = arith.mulf %35, %11 : vector<2x32xf32>
    %45 = arith.mulf %29, %37 : vector<2x32xf32>
    %46 = arith.addf %44, %45 : vector<2x32xf32>
    %47 = math.tanh %46 : vector<2x32xf32>
    %48 = arith.mulf %43, %47 : vector<2x32xf32>
    %49 = vector.broadcast %c0_i32 : i32 to vector<2x1xi32>
    %50 = arith.cmpi slt, %49, %9 : vector<2x1xi32>
    %51 = vector.shape_cast %50 : vector<2x1xi1> to vector<2x1xi1>
    %52 = vector.broadcast %51 : vector<2x1xi1> to vector<2x32xi1>
    %53 = arith.select %52, %48, %11 : vector<2x32xi1>, vector<2x32xf32>
    %54 = vector.shape_cast %50 : vector<2x1xi1> to vector<2x1xi1>
    %55 = vector.broadcast %54 : vector<2x1xi1> to vector<2x32xi1>
    %56 = arith.select %55, %46, %11 : vector<2x32xi1>, vector<2x32xf32>
    %c1_i32 = arith.constant 1 : i32
    %57 = arith.index_cast %c1_i32 : i32 to index
    %c0_24 = arith.constant 0 : index
    %c0_25 = arith.constant 0 : index
    %58 = vector.load %arg1[%57, %c0_24, %c0_25] : memref<8x2x1xi32, #tpu.memory_space<vmem>>, vector<1x2x1xi32>
    %59 = vector.shape_cast %58 : vector<1x2x1xi32> to vector<2x1xi32>
    %60 = vector.broadcast %59 : vector<2x1xi32> to vector<2x16xi32>
    %61 = arith.cmpi eq, %60, %10 : vector<2x16xi32>
    %62 = arith.extui %61 : vector<2x16xi1> to vector<2x16xi32>
    %63 = arith.sitofp %62 : vector<2x16xi32> to vector<2x16xf32>
    %cst_26 = arith.constant dense<0.000000e+00> : vector<2x128xf32>
    %64 = tpu.matmul %63, %2, %cst_26 {dimension_numbers = #tpu.dot_dimension_numbers<[1], [0], [0], [1], [0, 0, 1, 1], [], []>} : vector<2x16xf32>, vector<16x128xf32>, vector<2x128xf32> -> vector<2x128xf32>
    %cst_27 = arith.constant dense<0.000000e+00> : vector<2x128xf32>
    %65 = tpu.matmul %53, %5, %cst_27 {dimension_numbers = #tpu.dot_dimension_numbers<[1], [0], [0], [1], [0, 0, 1, 1], [], []>} : vector<2x32xf32>, vector<32x128xf32>, vector<2x128xf32> -> vector<2x128xf32>
    %66 = arith.addf %64, %65 : vector<2x128xf32>
    %67 = vector.broadcast %7 : vector<1x128xf32> to vector<2x128xf32>
    %68 = arith.addf %66, %67 : vector<2x128xf32>
    %69 = vector.extract_strided_slice %68 {offsets = [0, 0], sizes = [2, 32], strides = [1, 1]} : vector<2x128xf32> to vector<2x32xf32>
    %70 = arith.negf %69 : vector<2x32xf32>
    %71 = math.exp %70 : vector<2x32xf32>
    %cst_28 = arith.constant 1.000000e+00 : f32
    %72 = vector.broadcast %cst_28 : f32 to vector<2x32xf32>
    %73 = arith.addf %72, %71 : vector<2x32xf32>
    %74 = arith.divf %72, %73 : vector<2x32xf32>
    %75 = vector.extract_strided_slice %68 {offsets = [0, 32], sizes = [2, 32], strides = [1, 1]} : vector<2x128xf32> to vector<2x32xf32>
    %76 = arith.negf %75 : vector<2x32xf32>
    %77 = math.exp %76 : vector<2x32xf32>
    %cst_29 = arith.constant 1.000000e+00 : f32
    %78 = vector.broadcast %cst_29 : f32 to vector<2x32xf32>
    %79 = arith.addf %78, %77 : vector<2x32xf32>
    %80 = arith.divf %78, %79 : vector<2x32xf32>
    %81 = vector.extract_strided_slice %68 {offsets = [0, 64], sizes = [2, 32], strides = [1, 1]} : vector<2x128xf32> to vector<2x32xf32>
    %82 = math.tanh %81 : vector<2x32xf32>
    %83 = vector.extract_strided_slice %68 {offsets = [0, 96], sizes = [2, 32], strides = [1, 1]} : vector<2x128xf32> to vector<2x32xf32>
    %84 = arith.negf %83 : vector<2x32xf32>
    %85 = math.exp %84 : vector<2x32xf32>
    %cst_30 = arith.constant 1.000000e+00 : f32
    %86 = vector.broadcast %cst_30 : f32 to vector<2x32xf32>
    %87 = arith.addf %86, %85 : vector<2x32xf32>
    %88 = arith.divf %86, %87 : vector<2x32xf32>
    %89 = arith.mulf %80, %56 : vector<2x32xf32>
    %90 = arith.mulf %74, %82 : vector<2x32xf32>
    %91 = arith.addf %89, %90 : vector<2x32xf32>
    %92 = math.tanh %91 : vector<2x32xf32>
    %93 = arith.mulf %88, %92 : vector<2x32xf32>
    %94 = vector.broadcast %c1_i32 : i32 to vector<2x1xi32>
    %95 = arith.cmpi slt, %94, %9 : vector<2x1xi32>
    %96 = vector.shape_cast %95 : vector<2x1xi1> to vector<2x1xi1>
    %97 = vector.broadcast %96 : vector<2x1xi1> to vector<2x32xi1>
    %98 = arith.select %97, %93, %53 : vector<2x32xi1>, vector<2x32xf32>
    %99 = vector.shape_cast %95 : vector<2x1xi1> to vector<2x1xi1>
    %100 = vector.broadcast %99 : vector<2x1xi1> to vector<2x32xi1>
    %101 = arith.select %100, %91, %56 : vector<2x32xi1>, vector<2x32xf32>
    %c2_i32 = arith.constant 2 : i32
    %102 = arith.index_cast %c2_i32 : i32 to index
    %c0_31 = arith.constant 0 : index
    %c0_32 = arith.constant 0 : index
    %103 = vector.load %arg1[%102, %c0_31, %c0_32] : memref<8x2x1xi32, #tpu.memory_space<vmem>>, vector<1x2x1xi32>
    %104 = vector.shape_cast %103 : vector<1x2x1xi32> to vector<2x1xi32>
    %105 = vector.broadcast %104 : vector<2x1xi32> to vector<2x16xi32>
    %106 = arith.cmpi eq, %105, %10 : vector<2x16xi32>
    %107 = arith.extui %106 : vector<2x16xi1> to vector<2x16xi32>
    %108 = arith.sitofp %107 : vector<2x16xi32> to vector<2x16xf32>
    %cst_33 = arith.constant dense<0.000000e+00> : vector<2x128xf32>
    %109 = tpu.matmul %108, %2, %cst_33 {dimension_numbers = #tpu.dot_dimension_numbers<[1], [0], [0], [1], [0, 0, 1, 1], [], []>} : vector<2x16xf32>, vector<16x128xf32>, vector<2x128xf32> -> vector<2x128xf32>
    %cst_34 = arith.constant dense<0.000000e+00> : vector<2x128xf32>
    %110 = tpu.matmul %98, %5, %cst_34 {dimension_numbers = #tpu.dot_dimension_numbers<[1], [0], [0], [1], [0, 0, 1, 1], [], []>} : vector<2x32xf32>, vector<32x128xf32>, vector<2x128xf32> -> vector<2x128xf32>
    %111 = arith.addf %109, %110 : vector<2x128xf32>
    %112 = vector.broadcast %7 : vector<1x128xf32> to vector<2x128xf32>
    %113 = arith.addf %111, %112 : vector<2x128xf32>
    %114 = vector.extract_strided_slice %113 {offsets = [0, 0], sizes = [2, 32], strides = [1, 1]} : vector<2x128xf32> to vector<2x32xf32>
    %115 = arith.negf %114 : vector<2x32xf32>
    %116 = math.exp %115 : vector<2x32xf32>
    %cst_35 = arith.constant 1.000000e+00 : f32
    %117 = vector.broadcast %cst_35 : f32 to vector<2x32xf32>
    %118 = arith.addf %117, %116 : vector<2x32xf32>
    %119 = arith.divf %117, %118 : vector<2x32xf32>
    %120 = vector.extract_strided_slice %113 {offsets = [0, 32], sizes = [2, 32], strides = [1, 1]} : vector<2x128xf32> to vector<2x32xf32>
    %121 = arith.negf %120 : vector<2x32xf32>
    %122 = math.exp %121 : vector<2x32xf32>
    %cst_36 = arith.constant 1.000000e+00 : f32
    %123 = vector.broadcast %cst_36 : f32 to vector<2x32xf32>
    %124 = arith.addf %123, %122 : vector<2x32xf32>
    %125 = arith.divf %123, %124 : vector<2x32xf32>
    %126 = vector.extract_strided_slice %113 {offsets = [0, 64], sizes = [2, 32], strides = [1, 1]} : vector<2x128xf32> to vector<2x32xf32>
    %127 = math.tanh %126 : vector<2x32xf32>
    %128 = vector.extract_strided_slice %113 {offsets = [0, 96], sizes = [2, 32], strides = [1, 1]} : vector<2x128xf32> to vector<2x32xf32>
    %129 = arith.negf %128 : vector<2x32xf32>
    %130 = math.exp %129 : vector<2x32xf32>
    %cst_37 = arith.constant 1.000000e+00 : f32
    %131 = vector.broadcast %cst_37 : f32 to vector<2x32xf32>
    %132 = arith.addf %131, %130 : vector<2x32xf32>
    %133 = arith.divf %131, %132 : vector<2x32xf32>
    %134 = arith.mulf %125, %101 : vector<2x32xf32>
    %135 = arith.mulf %119, %127 : vector<2x32xf32>
    %136 = arith.addf %134, %135 : vector<2x32xf32>
    %137 = math.tanh %136 : vector<2x32xf32>
    %138 = arith.mulf %133, %137 : vector<2x32xf32>
    %139 = vector.broadcast %c2_i32 : i32 to vector<2x1xi32>
    %140 = arith.cmpi slt, %139, %9 : vector<2x1xi32>
    %141 = vector.shape_cast %140 : vector<2x1xi1> to vector<2x1xi1>
    %142 = vector.broadcast %141 : vector<2x1xi1> to vector<2x32xi1>
    %143 = arith.select %142, %138, %98 : vector<2x32xi1>, vector<2x32xf32>
    %144 = vector.shape_cast %140 : vector<2x1xi1> to vector<2x1xi1>
    %145 = vector.broadcast %144 : vector<2x1xi1> to vector<2x32xi1>
    %146 = arith.select %145, %136, %101 : vector<2x32xi1>, vector<2x32xf32>
    %c3_i32 = arith.constant 3 : i32
    %147 = arith.index_cast %c3_i32 : i32 to index
    %c0_38 = arith.constant 0 : index
    %c0_39 = arith.constant 0 : index
    %148 = vector.load %arg1[%147, %c0_38, %c0_39] : memref<8x2x1xi32, #tpu.memory_space<vmem>>, vector<1x2x1xi32>
    %149 = vector.shape_cast %148 : vector<1x2x1xi32> to vector<2x1xi32>
    %150 = vector.broadcast %149 : vector<2x1xi32> to vector<2x16xi32>
    %151 = arith.cmpi eq, %150, %10 : vector<2x16xi32>
    %152 = arith.extui %151 : vector<2x16xi1> to vector<2x16xi32>
    %153 = arith.sitofp %152 : vector<2x16xi32> to vector<2x16xf32>
    %cst_40 = arith.constant dense<0.000000e+00> : vector<2x128xf32>
    %154 = tpu.matmul %153, %2, %cst_40 {dimension_numbers = #tpu.dot_dimension_numbers<[1], [0], [0], [1], [0, 0, 1, 1], [], []>} : vector<2x16xf32>, vector<16x128xf32>, vector<2x128xf32> -> vector<2x128xf32>
    %cst_41 = arith.constant dense<0.000000e+00> : vector<2x128xf32>
    %155 = tpu.matmul %143, %5, %cst_41 {dimension_numbers = #tpu.dot_dimension_numbers<[1], [0], [0], [1], [0, 0, 1, 1], [], []>} : vector<2x32xf32>, vector<32x128xf32>, vector<2x128xf32> -> vector<2x128xf32>
    %156 = arith.addf %154, %155 : vector<2x128xf32>
    %157 = vector.broadcast %7 : vector<1x128xf32> to vector<2x128xf32>
    %158 = arith.addf %156, %157 : vector<2x128xf32>
    %159 = vector.extract_strided_slice %158 {offsets = [0, 0], sizes = [2, 32], strides = [1, 1]} : vector<2x128xf32> to vector<2x32xf32>
    %160 = arith.negf %159 : vector<2x32xf32>
    %161 = math.exp %160 : vector<2x32xf32>
    %cst_42 = arith.constant 1.000000e+00 : f32
    %162 = vector.broadcast %cst_42 : f32 to vector<2x32xf32>
    %163 = arith.addf %162, %161 : vector<2x32xf32>
    %164 = arith.divf %162, %163 : vector<2x32xf32>
    %165 = vector.extract_strided_slice %158 {offsets = [0, 32], sizes = [2, 32], strides = [1, 1]} : vector<2x128xf32> to vector<2x32xf32>
    %166 = arith.negf %165 : vector<2x32xf32>
    %167 = math.exp %166 : vector<2x32xf32>
    %cst_43 = arith.constant 1.000000e+00 : f32
    %168 = vector.broadcast %cst_43 : f32 to vector<2x32xf32>
    %169 = arith.addf %168, %167 : vector<2x32xf32>
    %170 = arith.divf %168, %169 : vector<2x32xf32>
    %171 = vector.extract_strided_slice %158 {offsets = [0, 64], sizes = [2, 32], strides = [1, 1]} : vector<2x128xf32> to vector<2x32xf32>
    %172 = math.tanh %171 : vector<2x32xf32>
    %173 = vector.extract_strided_slice %158 {offsets = [0, 96], sizes = [2, 32], strides = [1, 1]} : vector<2x128xf32> to vector<2x32xf32>
    %174 = arith.negf %173 : vector<2x32xf32>
    %175 = math.exp %174 : vector<2x32xf32>
    %cst_44 = arith.constant 1.000000e+00 : f32
    %176 = vector.broadcast %cst_44 : f32 to vector<2x32xf32>
    %177 = arith.addf %176, %175 : vector<2x32xf32>
    %178 = arith.divf %176, %177 : vector<2x32xf32>
    %179 = arith.mulf %170, %146 : vector<2x32xf32>
    %180 = arith.mulf %164, %172 : vector<2x32xf32>
    %181 = arith.addf %179, %180 : vector<2x32xf32>
    %182 = math.tanh %181 : vector<2x32xf32>
    %183 = arith.mulf %178, %182 : vector<2x32xf32>
    %184 = vector.broadcast %c3_i32 : i32 to vector<2x1xi32>
    %185 = arith.cmpi slt, %184, %9 : vector<2x1xi32>
    %186 = vector.shape_cast %185 : vector<2x1xi1> to vector<2x1xi1>
    %187 = vector.broadcast %186 : vector<2x1xi1> to vector<2x32xi1>
    %188 = arith.select %187, %183, %143 : vector<2x32xi1>, vector<2x32xf32>
    %189 = vector.shape_cast %185 : vector<2x1xi1> to vector<2x1xi1>
    %190 = vector.broadcast %189 : vector<2x1xi1> to vector<2x32xi1>
    %191 = arith.select %190, %181, %146 : vector<2x32xi1>, vector<2x32xf32>
    %c4_i32 = arith.constant 4 : i32
    %192 = arith.index_cast %c4_i32 : i32 to index
    %c0_45 = arith.constant 0 : index
    %c0_46 = arith.constant 0 : index
    %193 = vector.load %arg1[%192, %c0_45, %c0_46] : memref<8x2x1xi32, #tpu.memory_space<vmem>>, vector<1x2x1xi32>
    %194 = vector.shape_cast %193 : vector<1x2x1xi32> to vector<2x1xi32>
    %195 = vector.broadcast %194 : vector<2x1xi32> to vector<2x16xi32>
    %196 = arith.cmpi eq, %195, %10 : vector<2x16xi32>
    %197 = arith.extui %196 : vector<2x16xi1> to vector<2x16xi32>
    %198 = arith.sitofp %197 : vector<2x16xi32> to vector<2x16xf32>
    %cst_47 = arith.constant dense<0.000000e+00> : vector<2x128xf32>
    %199 = tpu.matmul %198, %2, %cst_47 {dimension_numbers = #tpu.dot_dimension_numbers<[1], [0], [0], [1], [0, 0, 1, 1], [], []>} : vector<2x16xf32>, vector<16x128xf32>, vector<2x128xf32> -> vector<2x128xf32>
    %cst_48 = arith.constant dense<0.000000e+00> : vector<2x128xf32>
    %200 = tpu.matmul %188, %5, %cst_48 {dimension_numbers = #tpu.dot_dimension_numbers<[1], [0], [0], [1], [0, 0, 1, 1], [], []>} : vector<2x32xf32>, vector<32x128xf32>, vector<2x128xf32> -> vector<2x128xf32>
    %201 = arith.addf %199, %200 : vector<2x128xf32>
    %202 = vector.broadcast %7 : vector<1x128xf32> to vector<2x128xf32>
    %203 = arith.addf %201, %202 : vector<2x128xf32>
    %204 = vector.extract_strided_slice %203 {offsets = [0, 0], sizes = [2, 32], strides = [1, 1]} : vector<2x128xf32> to vector<2x32xf32>
    %205 = arith.negf %204 : vector<2x32xf32>
    %206 = math.exp %205 : vector<2x32xf32>
    %cst_49 = arith.constant 1.000000e+00 : f32
    %207 = vector.broadcast %cst_49 : f32 to vector<2x32xf32>
    %208 = arith.addf %207, %206 : vector<2x32xf32>
    %209 = arith.divf %207, %208 : vector<2x32xf32>
    %210 = vector.extract_strided_slice %203 {offsets = [0, 32], sizes = [2, 32], strides = [1, 1]} : vector<2x128xf32> to vector<2x32xf32>
    %211 = arith.negf %210 : vector<2x32xf32>
    %212 = math.exp %211 : vector<2x32xf32>
    %cst_50 = arith.constant 1.000000e+00 : f32
    %213 = vector.broadcast %cst_50 : f32 to vector<2x32xf32>
    %214 = arith.addf %213, %212 : vector<2x32xf32>
    %215 = arith.divf %213, %214 : vector<2x32xf32>
    %216 = vector.extract_strided_slice %203 {offsets = [0, 64], sizes = [2, 32], strides = [1, 1]} : vector<2x128xf32> to vector<2x32xf32>
    %217 = math.tanh %216 : vector<2x32xf32>
    %218 = vector.extract_strided_slice %203 {offsets = [0, 96], sizes = [2, 32], strides = [1, 1]} : vector<2x128xf32> to vector<2x32xf32>
    %219 = arith.negf %218 : vector<2x32xf32>
    %220 = math.exp %219 : vector<2x32xf32>
    %cst_51 = arith.constant 1.000000e+00 : f32
    %221 = vector.broadcast %cst_51 : f32 to vector<2x32xf32>
    %222 = arith.addf %221, %220 : vector<2x32xf32>
    %223 = arith.divf %221, %222 : vector<2x32xf32>
    %224 = arith.mulf %215, %191 : vector<2x32xf32>
    %225 = arith.mulf %209, %217 : vector<2x32xf32>
    %226 = arith.addf %224, %225 : vector<2x32xf32>
    %227 = math.tanh %226 : vector<2x32xf32>
    %228 = arith.mulf %223, %227 : vector<2x32xf32>
    %229 = vector.broadcast %c4_i32 : i32 to vector<2x1xi32>
    %230 = arith.cmpi slt, %229, %9 : vector<2x1xi32>
    %231 = vector.shape_cast %230 : vector<2x1xi1> to vector<2x1xi1>
    %232 = vector.broadcast %231 : vector<2x1xi1> to vector<2x32xi1>
    %233 = arith.select %232, %228, %188 : vector<2x32xi1>, vector<2x32xf32>
    %234 = vector.shape_cast %230 : vector<2x1xi1> to vector<2x1xi1>
    %235 = vector.broadcast %234 : vector<2x1xi1> to vector<2x32xi1>
    %236 = arith.select %235, %226, %191 : vector<2x32xi1>, vector<2x32xf32>
    %c5_i32 = arith.constant 5 : i32
    %237 = arith.index_cast %c5_i32 : i32 to index
    %c0_52 = arith.constant 0 : index
    %c0_53 = arith.constant 0 : index
    %238 = vector.load %arg1[%237, %c0_52, %c0_53] : memref<8x2x1xi32, #tpu.memory_space<vmem>>, vector<1x2x1xi32>
    %239 = vector.shape_cast %238 : vector<1x2x1xi32> to vector<2x1xi32>
    %240 = vector.broadcast %239 : vector<2x1xi32> to vector<2x16xi32>
    %241 = arith.cmpi eq, %240, %10 : vector<2x16xi32>
    %242 = arith.extui %241 : vector<2x16xi1> to vector<2x16xi32>
    %243 = arith.sitofp %242 : vector<2x16xi32> to vector<2x16xf32>
    %cst_54 = arith.constant dense<0.000000e+00> : vector<2x128xf32>
    %244 = tpu.matmul %243, %2, %cst_54 {dimension_numbers = #tpu.dot_dimension_numbers<[1], [0], [0], [1], [0, 0, 1, 1], [], []>} : vector<2x16xf32>, vector<16x128xf32>, vector<2x128xf32> -> vector<2x128xf32>
    %cst_55 = arith.constant dense<0.000000e+00> : vector<2x128xf32>
    %245 = tpu.matmul %233, %5, %cst_55 {dimension_numbers = #tpu.dot_dimension_numbers<[1], [0], [0], [1], [0, 0, 1, 1], [], []>} : vector<2x32xf32>, vector<32x128xf32>, vector<2x128xf32> -> vector<2x128xf32>
    %246 = arith.addf %244, %245 : vector<2x128xf32>
    %247 = vector.broadcast %7 : vector<1x128xf32> to vector<2x128xf32>
    %248 = arith.addf %246, %247 : vector<2x128xf32>
    %249 = vector.extract_strided_slice %248 {offsets = [0, 0], sizes = [2, 32], strides = [1, 1]} : vector<2x128xf32> to vector<2x32xf32>
    %250 = arith.negf %249 : vector<2x32xf32>
    %251 = math.exp %250 : vector<2x32xf32>
    %cst_56 = arith.constant 1.000000e+00 : f32
    %252 = vector.broadcast %cst_56 : f32 to vector<2x32xf32>
    %253 = arith.addf %252, %251 : vector<2x32xf32>
    %254 = arith.divf %252, %253 : vector<2x32xf32>
    %255 = vector.extract_strided_slice %248 {offsets = [0, 32], sizes = [2, 32], strides = [1, 1]} : vector<2x128xf32> to vector<2x32xf32>
    %256 = arith.negf %255 : vector<2x32xf32>
    %257 = math.exp %256 : vector<2x32xf32>
    %cst_57 = arith.constant 1.000000e+00 : f32
    %258 = vector.broadcast %cst_57 : f32 to vector<2x32xf32>
    %259 = arith.addf %258, %257 : vector<2x32xf32>
    %260 = arith.divf %258, %259 : vector<2x32xf32>
    %261 = vector.extract_strided_slice %248 {offsets = [0, 64], sizes = [2, 32], strides = [1, 1]} : vector<2x128xf32> to vector<2x32xf32>
    %262 = math.tanh %261 : vector<2x32xf32>
    %263 = vector.extract_strided_slice %248 {offsets = [0, 96], sizes = [2, 32], strides = [1, 1]} : vector<2x128xf32> to vector<2x32xf32>
    %264 = arith.negf %263 : vector<2x32xf32>
    %265 = math.exp %264 : vector<2x32xf32>
    %cst_58 = arith.constant 1.000000e+00 : f32
    %266 = vector.broadcast %cst_58 : f32 to vector<2x32xf32>
    %267 = arith.addf %266, %265 : vector<2x32xf32>
    %268 = arith.divf %266, %267 : vector<2x32xf32>
    %269 = arith.mulf %260, %236 : vector<2x32xf32>
    %270 = arith.mulf %254, %262 : vector<2x32xf32>
    %271 = arith.addf %269, %270 : vector<2x32xf32>
    %272 = math.tanh %271 : vector<2x32xf32>
    %273 = arith.mulf %268, %272 : vector<2x32xf32>
    %274 = vector.broadcast %c5_i32 : i32 to vector<2x1xi32>
    %275 = arith.cmpi slt, %274, %9 : vector<2x1xi32>
    %276 = vector.shape_cast %275 : vector<2x1xi1> to vector<2x1xi1>
    %277 = vector.broadcast %276 : vector<2x1xi1> to vector<2x32xi1>
    %278 = arith.select %277, %273, %233 : vector<2x32xi1>, vector<2x32xf32>
    %279 = vector.shape_cast %275 : vector<2x1xi1> to vector<2x1xi1>
    %280 = vector.broadcast %279 : vector<2x1xi1> to vector<2x32xi1>
    %281 = arith.select %280, %271, %236 : vector<2x32xi1>, vector<2x32xf32>
    %c6_i32 = arith.constant 6 : i32
    %282 = arith.index_cast %c6_i32 : i32 to index
    %c0_59 = arith.constant 0 : index
    %c0_60 = arith.constant 0 : index
    %283 = vector.load %arg1[%282, %c0_59, %c0_60] : memref<8x2x1xi32, #tpu.memory_space<vmem>>, vector<1x2x1xi32>
    %284 = vector.shape_cast %283 : vector<1x2x1xi32> to vector<2x1xi32>
    %285 = vector.broadcast %284 : vector<2x1xi32> to vector<2x16xi32>
    %286 = arith.cmpi eq, %285, %10 : vector<2x16xi32>
    %287 = arith.extui %286 : vector<2x16xi1> to vector<2x16xi32>
    %288 = arith.sitofp %287 : vector<2x16xi32> to vector<2x16xf32>
    %cst_61 = arith.constant dense<0.000000e+00> : vector<2x128xf32>
    %289 = tpu.matmul %288, %2, %cst_61 {dimension_numbers = #tpu.dot_dimension_numbers<[1], [0], [0], [1], [0, 0, 1, 1], [], []>} : vector<2x16xf32>, vector<16x128xf32>, vector<2x128xf32> -> vector<2x128xf32>
    %cst_62 = arith.constant dense<0.000000e+00> : vector<2x128xf32>
    %290 = tpu.matmul %278, %5, %cst_62 {dimension_numbers = #tpu.dot_dimension_numbers<[1], [0], [0], [1], [0, 0, 1, 1], [], []>} : vector<2x32xf32>, vector<32x128xf32>, vector<2x128xf32> -> vector<2x128xf32>
    %291 = arith.addf %289, %290 : vector<2x128xf32>
    %292 = vector.broadcast %7 : vector<1x128xf32> to vector<2x128xf32>
    %293 = arith.addf %291, %292 : vector<2x128xf32>
    %294 = vector.extract_strided_slice %293 {offsets = [0, 0], sizes = [2, 32], strides = [1, 1]} : vector<2x128xf32> to vector<2x32xf32>
    %295 = arith.negf %294 : vector<2x32xf32>
    %296 = math.exp %295 : vector<2x32xf32>
    %cst_63 = arith.constant 1.000000e+00 : f32
    %297 = vector.broadcast %cst_63 : f32 to vector<2x32xf32>
    %298 = arith.addf %297, %296 : vector<2x32xf32>
    %299 = arith.divf %297, %298 : vector<2x32xf32>
    %300 = vector.extract_strided_slice %293 {offsets = [0, 32], sizes = [2, 32], strides = [1, 1]} : vector<2x128xf32> to vector<2x32xf32>
    %301 = arith.negf %300 : vector<2x32xf32>
    %302 = math.exp %301 : vector<2x32xf32>
    %cst_64 = arith.constant 1.000000e+00 : f32
    %303 = vector.broadcast %cst_64 : f32 to vector<2x32xf32>
    %304 = arith.addf %303, %302 : vector<2x32xf32>
    %305 = arith.divf %303, %304 : vector<2x32xf32>
    %306 = vector.extract_strided_slice %293 {offsets = [0, 64], sizes = [2, 32], strides = [1, 1]} : vector<2x128xf32> to vector<2x32xf32>
    %307 = math.tanh %306 : vector<2x32xf32>
    %308 = vector.extract_strided_slice %293 {offsets = [0, 96], sizes = [2, 32], strides = [1, 1]} : vector<2x128xf32> to vector<2x32xf32>
    %309 = arith.negf %308 : vector<2x32xf32>
    %310 = math.exp %309 : vector<2x32xf32>
    %cst_65 = arith.constant 1.000000e+00 : f32
    %311 = vector.broadcast %cst_65 : f32 to vector<2x32xf32>
    %312 = arith.addf %311, %310 : vector<2x32xf32>
    %313 = arith.divf %311, %312 : vector<2x32xf32>
    %314 = arith.mulf %305, %281 : vector<2x32xf32>
    %315 = arith.mulf %299, %307 : vector<2x32xf32>
    %316 = arith.addf %314, %315 : vector<2x32xf32>
    %317 = math.tanh %316 : vector<2x32xf32>
    %318 = arith.mulf %313, %317 : vector<2x32xf32>
    %319 = vector.broadcast %c6_i32 : i32 to vector<2x1xi32>
    %320 = arith.cmpi slt, %319, %9 : vector<2x1xi32>
    %321 = vector.shape_cast %320 : vector<2x1xi1> to vector<2x1xi1>
    %322 = vector.broadcast %321 : vector<2x1xi1> to vector<2x32xi1>
    %323 = arith.select %322, %318, %278 : vector<2x32xi1>, vector<2x32xf32>
    %324 = vector.shape_cast %320 : vector<2x1xi1> to vector<2x1xi1>
    %325 = vector.broadcast %324 : vector<2x1xi1> to vector<2x32xi1>
    %326 = arith.select %325, %316, %281 : vector<2x32xi1>, vector<2x32xf32>
    %c7_i32 = arith.constant 7 : i32
    %327 = arith.index_cast %c7_i32 : i32 to index
    %c0_66 = arith.constant 0 : index
    %c0_67 = arith.constant 0 : index
    %328 = vector.load %arg1[%327, %c0_66, %c0_67] : memref<8x2x1xi32, #tpu.memory_space<vmem>>, vector<1x2x1xi32>
    %329 = vector.shape_cast %328 : vector<1x2x1xi32> to vector<2x1xi32>
    %330 = vector.broadcast %329 : vector<2x1xi32> to vector<2x16xi32>
    %331 = arith.cmpi eq, %330, %10 : vector<2x16xi32>
    %332 = arith.extui %331 : vector<2x16xi1> to vector<2x16xi32>
    %333 = arith.sitofp %332 : vector<2x16xi32> to vector<2x16xf32>
    %cst_68 = arith.constant dense<0.000000e+00> : vector<2x128xf32>
    %334 = tpu.matmul %333, %2, %cst_68 {dimension_numbers = #tpu.dot_dimension_numbers<[1], [0], [0], [1], [0, 0, 1, 1], [], []>} : vector<2x16xf32>, vector<16x128xf32>, vector<2x128xf32> -> vector<2x128xf32>
    %cst_69 = arith.constant dense<0.000000e+00> : vector<2x128xf32>
    %335 = tpu.matmul %323, %5, %cst_69 {dimension_numbers = #tpu.dot_dimension_numbers<[1], [0], [0], [1], [0, 0, 1, 1], [], []>} : vector<2x32xf32>, vector<32x128xf32>, vector<2x128xf32> -> vector<2x128xf32>
    %336 = arith.addf %334, %335 : vector<2x128xf32>
    %337 = vector.broadcast %7 : vector<1x128xf32> to vector<2x128xf32>
    %338 = arith.addf %336, %337 : vector<2x128xf32>
    %339 = vector.extract_strided_slice %338 {offsets = [0, 0], sizes = [2, 32], strides = [1, 1]} : vector<2x128xf32> to vector<2x32xf32>
    %340 = arith.negf %339 : vector<2x32xf32>
    %341 = math.exp %340 : vector<2x32xf32>
    %cst_70 = arith.constant 1.000000e+00 : f32
    %342 = vector.broadcast %cst_70 : f32 to vector<2x32xf32>
    %343 = arith.addf %342, %341 : vector<2x32xf32>
    %344 = arith.divf %342, %343 : vector<2x32xf32>
    %345 = vector.extract_strided_slice %338 {offsets = [0, 32], sizes = [2, 32], strides = [1, 1]} : vector<2x128xf32> to vector<2x32xf32>
    %346 = arith.negf %345 : vector<2x32xf32>
    %347 = math.exp %346 : vector<2x32xf32>
    %cst_71 = arith.constant 1.000000e+00 : f32
    %348 = vector.broadcast %cst_71 : f32 to vector<2x32xf32>
    %349 = arith.addf %348, %347 : vector<2x32xf32>
    %350 = arith.divf %348, %349 : vector<2x32xf32>
    %351 = vector.extract_strided_slice %338 {offsets = [0, 64], sizes = [2, 32], strides = [1, 1]} : vector<2x128xf32> to vector<2x32xf32>
    %352 = math.tanh %351 : vector<2x32xf32>
    %353 = vector.extract_strided_slice %338 {offsets = [0, 96], sizes = [2, 32], strides = [1, 1]} : vector<2x128xf32> to vector<2x32xf32>
    %354 = arith.negf %353 : vector<2x32xf32>
    %355 = math.exp %354 : vector<2x32xf32>
    %cst_72 = arith.constant 1.000000e+00 : f32
    %356 = vector.broadcast %cst_72 : f32 to vector<2x32xf32>
    %357 = arith.addf %356, %355 : vector<2x32xf32>
    %358 = arith.divf %356, %357 : vector<2x32xf32>
    %359 = arith.mulf %350, %326 : vector<2x32xf32>
    %360 = arith.mulf %344, %352 : vector<2x32xf32>
    %361 = arith.addf %359, %360 : vector<2x32xf32>
    %362 = math.tanh %361 : vector<2x32xf32>
    %363 = arith.mulf %358, %362 : vector<2x32xf32>
    %364 = vector.broadcast %c7_i32 : i32 to vector<2x1xi32>
    %365 = arith.cmpi slt, %364, %9 : vector<2x1xi32>
    %366 = vector.shape_cast %365 : vector<2x1xi1> to vector<2x1xi1>
    %367 = vector.broadcast %366 : vector<2x1xi1> to vector<2x32xi1>
    %368 = arith.select %367, %363, %323 : vector<2x32xi1>, vector<2x32xf32>
    %369 = vector.shape_cast %365 : vector<2x1xi1> to vector<2x1xi1>
    %370 = vector.broadcast %369 : vector<2x1xi1> to vector<2x32xi1>
    %371 = arith.select %370, %361, %326 : vector<2x32xi1>, vector<2x32xf32>
    %c8_i32 = arith.constant 8 : i32
    %c0_i32_73 = arith.constant 0 : i32
    %c7_i32_74 = arith.constant 7 : i32
    %372 = arith.subi %c7_i32_74, %c0_i32_73 : i32
    %373 = arith.index_cast %372 : i32 to index
    %c0_75 = arith.constant 0 : index
    %c0_76 = arith.constant 0 : index
    %374 = vector.load %arg1[%373, %c0_75, %c0_76] : memref<8x2x1xi32, #tpu.memory_space<vmem>>, vector<1x2x1xi32>
    %375 = vector.shape_cast %374 : vector<1x2x1xi32> to vector<2x1xi32>
    %376 = vector.broadcast %375 : vector<2x1xi32> to vector<2x16xi32>
    %377 = arith.cmpi eq, %376, %10 : vector<2x16xi32>
    %378 = arith.extui %377 : vector<2x16xi1> to vector<2x16xi32>
    %379 = arith.sitofp %378 : vector<2x16xi32> to vector<2x16xf32>
    %cst_77 = arith.constant dense<0.000000e+00> : vector<2x128xf32>
    %380 = tpu.matmul %379, %4, %cst_77 {dimension_numbers = #tpu.dot_dimension_numbers<[1], [0], [0], [1], [0, 0, 1, 1], [], []>} : vector<2x16xf32>, vector<16x128xf32>, vector<2x128xf32> -> vector<2x128xf32>
    %cst_78 = arith.constant dense<0.000000e+00> : vector<2x128xf32>
    %381 = tpu.matmul %11, %6, %cst_78 {dimension_numbers = #tpu.dot_dimension_numbers<[1], [0], [0], [1], [0, 0, 1, 1], [], []>} : vector<2x32xf32>, vector<32x128xf32>, vector<2x128xf32> -> vector<2x128xf32>
    %382 = arith.addf %380, %381 : vector<2x128xf32>
    %383 = vector.broadcast %8 : vector<1x128xf32> to vector<2x128xf32>
    %384 = arith.addf %382, %383 : vector<2x128xf32>
    %385 = vector.extract_strided_slice %384 {offsets = [0, 0], sizes = [2, 32], strides = [1, 1]} : vector<2x128xf32> to vector<2x32xf32>
    %386 = arith.negf %385 : vector<2x32xf32>
    %387 = math.exp %386 : vector<2x32xf32>
    %cst_79 = arith.constant 1.000000e+00 : f32
    %388 = vector.broadcast %cst_79 : f32 to vector<2x32xf32>
    %389 = arith.addf %388, %387 : vector<2x32xf32>
    %390 = arith.divf %388, %389 : vector<2x32xf32>
    %391 = vector.extract_strided_slice %384 {offsets = [0, 32], sizes = [2, 32], strides = [1, 1]} : vector<2x128xf32> to vector<2x32xf32>
    %392 = arith.negf %391 : vector<2x32xf32>
    %393 = math.exp %392 : vector<2x32xf32>
    %cst_80 = arith.constant 1.000000e+00 : f32
    %394 = vector.broadcast %cst_80 : f32 to vector<2x32xf32>
    %395 = arith.addf %394, %393 : vector<2x32xf32>
    %396 = arith.divf %394, %395 : vector<2x32xf32>
    %397 = vector.extract_strided_slice %384 {offsets = [0, 64], sizes = [2, 32], strides = [1, 1]} : vector<2x128xf32> to vector<2x32xf32>
    %398 = math.tanh %397 : vector<2x32xf32>
    %399 = vector.extract_strided_slice %384 {offsets = [0, 96], sizes = [2, 32], strides = [1, 1]} : vector<2x128xf32> to vector<2x32xf32>
    %400 = arith.negf %399 : vector<2x32xf32>
    %401 = math.exp %400 : vector<2x32xf32>
    %cst_81 = arith.constant 1.000000e+00 : f32
    %402 = vector.broadcast %cst_81 : f32 to vector<2x32xf32>
    %403 = arith.addf %402, %401 : vector<2x32xf32>
    %404 = arith.divf %402, %403 : vector<2x32xf32>
    %405 = arith.mulf %396, %11 : vector<2x32xf32>
    %406 = arith.mulf %390, %398 : vector<2x32xf32>
    %407 = arith.addf %405, %406 : vector<2x32xf32>
    %408 = math.tanh %407 : vector<2x32xf32>
    %409 = arith.mulf %404, %408 : vector<2x32xf32>
    %410 = vector.broadcast %372 : i32 to vector<2x1xi32>
    %411 = arith.cmpi slt, %410, %9 : vector<2x1xi32>
    %412 = vector.shape_cast %411 : vector<2x1xi1> to vector<2x1xi1>
    %413 = vector.broadcast %412 : vector<2x1xi1> to vector<2x32xi1>
    %414 = arith.select %413, %409, %11 : vector<2x32xi1>, vector<2x32xf32>
    %415 = vector.shape_cast %411 : vector<2x1xi1> to vector<2x1xi1>
    %416 = vector.broadcast %415 : vector<2x1xi1> to vector<2x32xi1>
    %417 = arith.select %416, %407, %11 : vector<2x32xi1>, vector<2x32xf32>
    %c1_i32_82 = arith.constant 1 : i32
    %c7_i32_83 = arith.constant 7 : i32
    %418 = arith.subi %c7_i32_83, %c1_i32_82 : i32
    %419 = arith.index_cast %418 : i32 to index
    %c0_84 = arith.constant 0 : index
    %c0_85 = arith.constant 0 : index
    %420 = vector.load %arg1[%419, %c0_84, %c0_85] : memref<8x2x1xi32, #tpu.memory_space<vmem>>, vector<1x2x1xi32>
    %421 = vector.shape_cast %420 : vector<1x2x1xi32> to vector<2x1xi32>
    %422 = vector.broadcast %421 : vector<2x1xi32> to vector<2x16xi32>
    %423 = arith.cmpi eq, %422, %10 : vector<2x16xi32>
    %424 = arith.extui %423 : vector<2x16xi1> to vector<2x16xi32>
    %425 = arith.sitofp %424 : vector<2x16xi32> to vector<2x16xf32>
    %cst_86 = arith.constant dense<0.000000e+00> : vector<2x128xf32>
    %426 = tpu.matmul %425, %4, %cst_86 {dimension_numbers = #tpu.dot_dimension_numbers<[1], [0], [0], [1], [0, 0, 1, 1], [], []>} : vector<2x16xf32>, vector<16x128xf32>, vector<2x128xf32> -> vector<2x128xf32>
    %cst_87 = arith.constant dense<0.000000e+00> : vector<2x128xf32>
    %427 = tpu.matmul %414, %6, %cst_87 {dimension_numbers = #tpu.dot_dimension_numbers<[1], [0], [0], [1], [0, 0, 1, 1], [], []>} : vector<2x32xf32>, vector<32x128xf32>, vector<2x128xf32> -> vector<2x128xf32>
    %428 = arith.addf %426, %427 : vector<2x128xf32>
    %429 = vector.broadcast %8 : vector<1x128xf32> to vector<2x128xf32>
    %430 = arith.addf %428, %429 : vector<2x128xf32>
    %431 = vector.extract_strided_slice %430 {offsets = [0, 0], sizes = [2, 32], strides = [1, 1]} : vector<2x128xf32> to vector<2x32xf32>
    %432 = arith.negf %431 : vector<2x32xf32>
    %433 = math.exp %432 : vector<2x32xf32>
    %cst_88 = arith.constant 1.000000e+00 : f32
    %434 = vector.broadcast %cst_88 : f32 to vector<2x32xf32>
    %435 = arith.addf %434, %433 : vector<2x32xf32>
    %436 = arith.divf %434, %435 : vector<2x32xf32>
    %437 = vector.extract_strided_slice %430 {offsets = [0, 32], sizes = [2, 32], strides = [1, 1]} : vector<2x128xf32> to vector<2x32xf32>
    %438 = arith.negf %437 : vector<2x32xf32>
    %439 = math.exp %438 : vector<2x32xf32>
    %cst_89 = arith.constant 1.000000e+00 : f32
    %440 = vector.broadcast %cst_89 : f32 to vector<2x32xf32>
    %441 = arith.addf %440, %439 : vector<2x32xf32>
    %442 = arith.divf %440, %441 : vector<2x32xf32>
    %443 = vector.extract_strided_slice %430 {offsets = [0, 64], sizes = [2, 32], strides = [1, 1]} : vector<2x128xf32> to vector<2x32xf32>
    %444 = math.tanh %443 : vector<2x32xf32>
    %445 = vector.extract_strided_slice %430 {offsets = [0, 96], sizes = [2, 32], strides = [1, 1]} : vector<2x128xf32> to vector<2x32xf32>
    %446 = arith.negf %445 : vector<2x32xf32>
    %447 = math.exp %446 : vector<2x32xf32>
    %cst_90 = arith.constant 1.000000e+00 : f32
    %448 = vector.broadcast %cst_90 : f32 to vector<2x32xf32>
    %449 = arith.addf %448, %447 : vector<2x32xf32>
    %450 = arith.divf %448, %449 : vector<2x32xf32>
    %451 = arith.mulf %442, %417 : vector<2x32xf32>
    %452 = arith.mulf %436, %444 : vector<2x32xf32>
    %453 = arith.addf %451, %452 : vector<2x32xf32>
    %454 = math.tanh %453 : vector<2x32xf32>
    %455 = arith.mulf %450, %454 : vector<2x32xf32>
    %456 = vector.broadcast %418 : i32 to vector<2x1xi32>
    %457 = arith.cmpi slt, %456, %9 : vector<2x1xi32>
    %458 = vector.shape_cast %457 : vector<2x1xi1> to vector<2x1xi1>
    %459 = vector.broadcast %458 : vector<2x1xi1> to vector<2x32xi1>
    %460 = arith.select %459, %455, %414 : vector<2x32xi1>, vector<2x32xf32>
    %461 = vector.shape_cast %457 : vector<2x1xi1> to vector<2x1xi1>
    %462 = vector.broadcast %461 : vector<2x1xi1> to vector<2x32xi1>
    %463 = arith.select %462, %453, %417 : vector<2x32xi1>, vector<2x32xf32>
    %c2_i32_91 = arith.constant 2 : i32
    %c7_i32_92 = arith.constant 7 : i32
    %464 = arith.subi %c7_i32_92, %c2_i32_91 : i32
    %465 = arith.index_cast %464 : i32 to index
    %c0_93 = arith.constant 0 : index
    %c0_94 = arith.constant 0 : index
    %466 = vector.load %arg1[%465, %c0_93, %c0_94] : memref<8x2x1xi32, #tpu.memory_space<vmem>>, vector<1x2x1xi32>
    %467 = vector.shape_cast %466 : vector<1x2x1xi32> to vector<2x1xi32>
    %468 = vector.broadcast %467 : vector<2x1xi32> to vector<2x16xi32>
    %469 = arith.cmpi eq, %468, %10 : vector<2x16xi32>
    %470 = arith.extui %469 : vector<2x16xi1> to vector<2x16xi32>
    %471 = arith.sitofp %470 : vector<2x16xi32> to vector<2x16xf32>
    %cst_95 = arith.constant dense<0.000000e+00> : vector<2x128xf32>
    %472 = tpu.matmul %471, %4, %cst_95 {dimension_numbers = #tpu.dot_dimension_numbers<[1], [0], [0], [1], [0, 0, 1, 1], [], []>} : vector<2x16xf32>, vector<16x128xf32>, vector<2x128xf32> -> vector<2x128xf32>
    %cst_96 = arith.constant dense<0.000000e+00> : vector<2x128xf32>
    %473 = tpu.matmul %460, %6, %cst_96 {dimension_numbers = #tpu.dot_dimension_numbers<[1], [0], [0], [1], [0, 0, 1, 1], [], []>} : vector<2x32xf32>, vector<32x128xf32>, vector<2x128xf32> -> vector<2x128xf32>
    %474 = arith.addf %472, %473 : vector<2x128xf32>
    %475 = vector.broadcast %8 : vector<1x128xf32> to vector<2x128xf32>
    %476 = arith.addf %474, %475 : vector<2x128xf32>
    %477 = vector.extract_strided_slice %476 {offsets = [0, 0], sizes = [2, 32], strides = [1, 1]} : vector<2x128xf32> to vector<2x32xf32>
    %478 = arith.negf %477 : vector<2x32xf32>
    %479 = math.exp %478 : vector<2x32xf32>
    %cst_97 = arith.constant 1.000000e+00 : f32
    %480 = vector.broadcast %cst_97 : f32 to vector<2x32xf32>
    %481 = arith.addf %480, %479 : vector<2x32xf32>
    %482 = arith.divf %480, %481 : vector<2x32xf32>
    %483 = vector.extract_strided_slice %476 {offsets = [0, 32], sizes = [2, 32], strides = [1, 1]} : vector<2x128xf32> to vector<2x32xf32>
    %484 = arith.negf %483 : vector<2x32xf32>
    %485 = math.exp %484 : vector<2x32xf32>
    %cst_98 = arith.constant 1.000000e+00 : f32
    %486 = vector.broadcast %cst_98 : f32 to vector<2x32xf32>
    %487 = arith.addf %486, %485 : vector<2x32xf32>
    %488 = arith.divf %486, %487 : vector<2x32xf32>
    %489 = vector.extract_strided_slice %476 {offsets = [0, 64], sizes = [2, 32], strides = [1, 1]} : vector<2x128xf32> to vector<2x32xf32>
    %490 = math.tanh %489 : vector<2x32xf32>
    %491 = vector.extract_strided_slice %476 {offsets = [0, 96], sizes = [2, 32], strides = [1, 1]} : vector<2x128xf32> to vector<2x32xf32>
    %492 = arith.negf %491 : vector<2x32xf32>
    %493 = math.exp %492 : vector<2x32xf32>
    %cst_99 = arith.constant 1.000000e+00 : f32
    %494 = vector.broadcast %cst_99 : f32 to vector<2x32xf32>
    %495 = arith.addf %494, %493 : vector<2x32xf32>
    %496 = arith.divf %494, %495 : vector<2x32xf32>
    %497 = arith.mulf %488, %463 : vector<2x32xf32>
    %498 = arith.mulf %482, %490 : vector<2x32xf32>
    %499 = arith.addf %497, %498 : vector<2x32xf32>
    %500 = math.tanh %499 : vector<2x32xf32>
    %501 = arith.mulf %496, %500 : vector<2x32xf32>
    %502 = vector.broadcast %464 : i32 to vector<2x1xi32>
    %503 = arith.cmpi slt, %502, %9 : vector<2x1xi32>
    %504 = vector.shape_cast %503 : vector<2x1xi1> to vector<2x1xi1>
    %505 = vector.broadcast %504 : vector<2x1xi1> to vector<2x32xi1>
    %506 = arith.select %505, %501, %460 : vector<2x32xi1>, vector<2x32xf32>
    %507 = vector.shape_cast %503 : vector<2x1xi1> to vector<2x1xi1>
    %508 = vector.broadcast %507 : vector<2x1xi1> to vector<2x32xi1>
    %509 = arith.select %508, %499, %463 : vector<2x32xi1>, vector<2x32xf32>
    %c3_i32_100 = arith.constant 3 : i32
    %c7_i32_101 = arith.constant 7 : i32
    %510 = arith.subi %c7_i32_101, %c3_i32_100 : i32
    %511 = arith.index_cast %510 : i32 to index
    %c0_102 = arith.constant 0 : index
    %c0_103 = arith.constant 0 : index
    %512 = vector.load %arg1[%511, %c0_102, %c0_103] : memref<8x2x1xi32, #tpu.memory_space<vmem>>, vector<1x2x1xi32>
    %513 = vector.shape_cast %512 : vector<1x2x1xi32> to vector<2x1xi32>
    %514 = vector.broadcast %513 : vector<2x1xi32> to vector<2x16xi32>
    %515 = arith.cmpi eq, %514, %10 : vector<2x16xi32>
    %516 = arith.extui %515 : vector<2x16xi1> to vector<2x16xi32>
    %517 = arith.sitofp %516 : vector<2x16xi32> to vector<2x16xf32>
    %cst_104 = arith.constant dense<0.000000e+00> : vector<2x128xf32>
    %518 = tpu.matmul %517, %4, %cst_104 {dimension_numbers = #tpu.dot_dimension_numbers<[1], [0], [0], [1], [0, 0, 1, 1], [], []>} : vector<2x16xf32>, vector<16x128xf32>, vector<2x128xf32> -> vector<2x128xf32>
    %cst_105 = arith.constant dense<0.000000e+00> : vector<2x128xf32>
    %519 = tpu.matmul %506, %6, %cst_105 {dimension_numbers = #tpu.dot_dimension_numbers<[1], [0], [0], [1], [0, 0, 1, 1], [], []>} : vector<2x32xf32>, vector<32x128xf32>, vector<2x128xf32> -> vector<2x128xf32>
    %520 = arith.addf %518, %519 : vector<2x128xf32>
    %521 = vector.broadcast %8 : vector<1x128xf32> to vector<2x128xf32>
    %522 = arith.addf %520, %521 : vector<2x128xf32>
    %523 = vector.extract_strided_slice %522 {offsets = [0, 0], sizes = [2, 32], strides = [1, 1]} : vector<2x128xf32> to vector<2x32xf32>
    %524 = arith.negf %523 : vector<2x32xf32>
    %525 = math.exp %524 : vector<2x32xf32>
    %cst_106 = arith.constant 1.000000e+00 : f32
    %526 = vector.broadcast %cst_106 : f32 to vector<2x32xf32>
    %527 = arith.addf %526, %525 : vector<2x32xf32>
    %528 = arith.divf %526, %527 : vector<2x32xf32>
    %529 = vector.extract_strided_slice %522 {offsets = [0, 32], sizes = [2, 32], strides = [1, 1]} : vector<2x128xf32> to vector<2x32xf32>
    %530 = arith.negf %529 : vector<2x32xf32>
    %531 = math.exp %530 : vector<2x32xf32>
    %cst_107 = arith.constant 1.000000e+00 : f32
    %532 = vector.broadcast %cst_107 : f32 to vector<2x32xf32>
    %533 = arith.addf %532, %531 : vector<2x32xf32>
    %534 = arith.divf %532, %533 : vector<2x32xf32>
    %535 = vector.extract_strided_slice %522 {offsets = [0, 64], sizes = [2, 32], strides = [1, 1]} : vector<2x128xf32> to vector<2x32xf32>
    %536 = math.tanh %535 : vector<2x32xf32>
    %537 = vector.extract_strided_slice %522 {offsets = [0, 96], sizes = [2, 32], strides = [1, 1]} : vector<2x128xf32> to vector<2x32xf32>
    %538 = arith.negf %537 : vector<2x32xf32>
    %539 = math.exp %538 : vector<2x32xf32>
    %cst_108 = arith.constant 1.000000e+00 : f32
    %540 = vector.broadcast %cst_108 : f32 to vector<2x32xf32>
    %541 = arith.addf %540, %539 : vector<2x32xf32>
    %542 = arith.divf %540, %541 : vector<2x32xf32>
    %543 = arith.mulf %534, %509 : vector<2x32xf32>
    %544 = arith.mulf %528, %536 : vector<2x32xf32>
    %545 = arith.addf %543, %544 : vector<2x32xf32>
    %546 = math.tanh %545 : vector<2x32xf32>
    %547 = arith.mulf %542, %546 : vector<2x32xf32>
    %548 = vector.broadcast %510 : i32 to vector<2x1xi32>
    %549 = arith.cmpi slt, %548, %9 : vector<2x1xi32>
    %550 = vector.shape_cast %549 : vector<2x1xi1> to vector<2x1xi1>
    %551 = vector.broadcast %550 : vector<2x1xi1> to vector<2x32xi1>
    %552 = arith.select %551, %547, %506 : vector<2x32xi1>, vector<2x32xf32>
    %553 = vector.shape_cast %549 : vector<2x1xi1> to vector<2x1xi1>
    %554 = vector.broadcast %553 : vector<2x1xi1> to vector<2x32xi1>
    %555 = arith.select %554, %545, %509 : vector<2x32xi1>, vector<2x32xf32>
    %c4_i32_109 = arith.constant 4 : i32
    %c7_i32_110 = arith.constant 7 : i32
    %556 = arith.subi %c7_i32_110, %c4_i32_109 : i32
    %557 = arith.index_cast %556 : i32 to index
    %c0_111 = arith.constant 0 : index
    %c0_112 = arith.constant 0 : index
    %558 = vector.load %arg1[%557, %c0_111, %c0_112] : memref<8x2x1xi32, #tpu.memory_space<vmem>>, vector<1x2x1xi32>
    %559 = vector.shape_cast %558 : vector<1x2x1xi32> to vector<2x1xi32>
    %560 = vector.broadcast %559 : vector<2x1xi32> to vector<2x16xi32>
    %561 = arith.cmpi eq, %560, %10 : vector<2x16xi32>
    %562 = arith.extui %561 : vector<2x16xi1> to vector<2x16xi32>
    %563 = arith.sitofp %562 : vector<2x16xi32> to vector<2x16xf32>
    %cst_113 = arith.constant dense<0.000000e+00> : vector<2x128xf32>
    %564 = tpu.matmul %563, %4, %cst_113 {dimension_numbers = #tpu.dot_dimension_numbers<[1], [0], [0], [1], [0, 0, 1, 1], [], []>} : vector<2x16xf32>, vector<16x128xf32>, vector<2x128xf32> -> vector<2x128xf32>
    %cst_114 = arith.constant dense<0.000000e+00> : vector<2x128xf32>
    %565 = tpu.matmul %552, %6, %cst_114 {dimension_numbers = #tpu.dot_dimension_numbers<[1], [0], [0], [1], [0, 0, 1, 1], [], []>} : vector<2x32xf32>, vector<32x128xf32>, vector<2x128xf32> -> vector<2x128xf32>
    %566 = arith.addf %564, %565 : vector<2x128xf32>
    %567 = vector.broadcast %8 : vector<1x128xf32> to vector<2x128xf32>
    %568 = arith.addf %566, %567 : vector<2x128xf32>
    %569 = vector.extract_strided_slice %568 {offsets = [0, 0], sizes = [2, 32], strides = [1, 1]} : vector<2x128xf32> to vector<2x32xf32>
    %570 = arith.negf %569 : vector<2x32xf32>
    %571 = math.exp %570 : vector<2x32xf32>
    %cst_115 = arith.constant 1.000000e+00 : f32
    %572 = vector.broadcast %cst_115 : f32 to vector<2x32xf32>
    %573 = arith.addf %572, %571 : vector<2x32xf32>
    %574 = arith.divf %572, %573 : vector<2x32xf32>
    %575 = vector.extract_strided_slice %568 {offsets = [0, 32], sizes = [2, 32], strides = [1, 1]} : vector<2x128xf32> to vector<2x32xf32>
    %576 = arith.negf %575 : vector<2x32xf32>
    %577 = math.exp %576 : vector<2x32xf32>
    %cst_116 = arith.constant 1.000000e+00 : f32
    %578 = vector.broadcast %cst_116 : f32 to vector<2x32xf32>
    %579 = arith.addf %578, %577 : vector<2x32xf32>
    %580 = arith.divf %578, %579 : vector<2x32xf32>
    %581 = vector.extract_strided_slice %568 {offsets = [0, 64], sizes = [2, 32], strides = [1, 1]} : vector<2x128xf32> to vector<2x32xf32>
    %582 = math.tanh %581 : vector<2x32xf32>
    %583 = vector.extract_strided_slice %568 {offsets = [0, 96], sizes = [2, 32], strides = [1, 1]} : vector<2x128xf32> to vector<2x32xf32>
    %584 = arith.negf %583 : vector<2x32xf32>
    %585 = math.exp %584 : vector<2x32xf32>
    %cst_117 = arith.constant 1.000000e+00 : f32
    %586 = vector.broadcast %cst_117 : f32 to vector<2x32xf32>
    %587 = arith.addf %586, %585 : vector<2x32xf32>
    %588 = arith.divf %586, %587 : vector<2x32xf32>
    %589 = arith.mulf %580, %555 : vector<2x32xf32>
    %590 = arith.mulf %574, %582 : vector<2x32xf32>
    %591 = arith.addf %589, %590 : vector<2x32xf32>
    %592 = math.tanh %591 : vector<2x32xf32>
    %593 = arith.mulf %588, %592 : vector<2x32xf32>
    %594 = vector.broadcast %556 : i32 to vector<2x1xi32>
    %595 = arith.cmpi slt, %594, %9 : vector<2x1xi32>
    %596 = vector.shape_cast %595 : vector<2x1xi1> to vector<2x1xi1>
    %597 = vector.broadcast %596 : vector<2x1xi1> to vector<2x32xi1>
    %598 = arith.select %597, %593, %552 : vector<2x32xi1>, vector<2x32xf32>
    %599 = vector.shape_cast %595 : vector<2x1xi1> to vector<2x1xi1>
    %600 = vector.broadcast %599 : vector<2x1xi1> to vector<2x32xi1>
    %601 = arith.select %600, %591, %555 : vector<2x32xi1>, vector<2x32xf32>
    %c5_i32_118 = arith.constant 5 : i32
    %c7_i32_119 = arith.constant 7 : i32
    %602 = arith.subi %c7_i32_119, %c5_i32_118 : i32
    %603 = arith.index_cast %602 : i32 to index
    %c0_120 = arith.constant 0 : index
    %c0_121 = arith.constant 0 : index
    %604 = vector.load %arg1[%603, %c0_120, %c0_121] : memref<8x2x1xi32, #tpu.memory_space<vmem>>, vector<1x2x1xi32>
    %605 = vector.shape_cast %604 : vector<1x2x1xi32> to vector<2x1xi32>
    %606 = vector.broadcast %605 : vector<2x1xi32> to vector<2x16xi32>
    %607 = arith.cmpi eq, %606, %10 : vector<2x16xi32>
    %608 = arith.extui %607 : vector<2x16xi1> to vector<2x16xi32>
    %609 = arith.sitofp %608 : vector<2x16xi32> to vector<2x16xf32>
    %cst_122 = arith.constant dense<0.000000e+00> : vector<2x128xf32>
    %610 = tpu.matmul %609, %4, %cst_122 {dimension_numbers = #tpu.dot_dimension_numbers<[1], [0], [0], [1], [0, 0, 1, 1], [], []>} : vector<2x16xf32>, vector<16x128xf32>, vector<2x128xf32> -> vector<2x128xf32>
    %cst_123 = arith.constant dense<0.000000e+00> : vector<2x128xf32>
    %611 = tpu.matmul %598, %6, %cst_123 {dimension_numbers = #tpu.dot_dimension_numbers<[1], [0], [0], [1], [0, 0, 1, 1], [], []>} : vector<2x32xf32>, vector<32x128xf32>, vector<2x128xf32> -> vector<2x128xf32>
    %612 = arith.addf %610, %611 : vector<2x128xf32>
    %613 = vector.broadcast %8 : vector<1x128xf32> to vector<2x128xf32>
    %614 = arith.addf %612, %613 : vector<2x128xf32>
    %615 = vector.extract_strided_slice %614 {offsets = [0, 0], sizes = [2, 32], strides = [1, 1]} : vector<2x128xf32> to vector<2x32xf32>
    %616 = arith.negf %615 : vector<2x32xf32>
    %617 = math.exp %616 : vector<2x32xf32>
    %cst_124 = arith.constant 1.000000e+00 : f32
    %618 = vector.broadcast %cst_124 : f32 to vector<2x32xf32>
    %619 = arith.addf %618, %617 : vector<2x32xf32>
    %620 = arith.divf %618, %619 : vector<2x32xf32>
    %621 = vector.extract_strided_slice %614 {offsets = [0, 32], sizes = [2, 32], strides = [1, 1]} : vector<2x128xf32> to vector<2x32xf32>
    %622 = arith.negf %621 : vector<2x32xf32>
    %623 = math.exp %622 : vector<2x32xf32>
    %cst_125 = arith.constant 1.000000e+00 : f32
    %624 = vector.broadcast %cst_125 : f32 to vector<2x32xf32>
    %625 = arith.addf %624, %623 : vector<2x32xf32>
    %626 = arith.divf %624, %625 : vector<2x32xf32>
    %627 = vector.extract_strided_slice %614 {offsets = [0, 64], sizes = [2, 32], strides = [1, 1]} : vector<2x128xf32> to vector<2x32xf32>
    %628 = math.tanh %627 : vector<2x32xf32>
    %629 = vector.extract_strided_slice %614 {offsets = [0, 96], sizes = [2, 32], strides = [1, 1]} : vector<2x128xf32> to vector<2x32xf32>
    %630 = arith.negf %629 : vector<2x32xf32>
    %631 = math.exp %630 : vector<2x32xf32>
    %cst_126 = arith.constant 1.000000e+00 : f32
    %632 = vector.broadcast %cst_126 : f32 to vector<2x32xf32>
    %633 = arith.addf %632, %631 : vector<2x32xf32>
    %634 = arith.divf %632, %633 : vector<2x32xf32>
    %635 = arith.mulf %626, %601 : vector<2x32xf32>
    %636 = arith.mulf %620, %628 : vector<2x32xf32>
    %637 = arith.addf %635, %636 : vector<2x32xf32>
    %638 = math.tanh %637 : vector<2x32xf32>
    %639 = arith.mulf %634, %638 : vector<2x32xf32>
    %640 = vector.broadcast %602 : i32 to vector<2x1xi32>
    %641 = arith.cmpi slt, %640, %9 : vector<2x1xi32>
    %642 = vector.shape_cast %641 : vector<2x1xi1> to vector<2x1xi1>
    %643 = vector.broadcast %642 : vector<2x1xi1> to vector<2x32xi1>
    %644 = arith.select %643, %639, %598 : vector<2x32xi1>, vector<2x32xf32>
    %645 = vector.shape_cast %641 : vector<2x1xi1> to vector<2x1xi1>
    %646 = vector.broadcast %645 : vector<2x1xi1> to vector<2x32xi1>
    %647 = arith.select %646, %637, %601 : vector<2x32xi1>, vector<2x32xf32>
    %c6_i32_127 = arith.constant 6 : i32
    %c7_i32_128 = arith.constant 7 : i32
    %648 = arith.subi %c7_i32_128, %c6_i32_127 : i32
    %649 = arith.index_cast %648 : i32 to index
    %c0_129 = arith.constant 0 : index
    %c0_130 = arith.constant 0 : index
    %650 = vector.load %arg1[%649, %c0_129, %c0_130] : memref<8x2x1xi32, #tpu.memory_space<vmem>>, vector<1x2x1xi32>
    %651 = vector.shape_cast %650 : vector<1x2x1xi32> to vector<2x1xi32>
    %652 = vector.broadcast %651 : vector<2x1xi32> to vector<2x16xi32>
    %653 = arith.cmpi eq, %652, %10 : vector<2x16xi32>
    %654 = arith.extui %653 : vector<2x16xi1> to vector<2x16xi32>
    %655 = arith.sitofp %654 : vector<2x16xi32> to vector<2x16xf32>
    %cst_131 = arith.constant dense<0.000000e+00> : vector<2x128xf32>
    %656 = tpu.matmul %655, %4, %cst_131 {dimension_numbers = #tpu.dot_dimension_numbers<[1], [0], [0], [1], [0, 0, 1, 1], [], []>} : vector<2x16xf32>, vector<16x128xf32>, vector<2x128xf32> -> vector<2x128xf32>
    %cst_132 = arith.constant dense<0.000000e+00> : vector<2x128xf32>
    %657 = tpu.matmul %644, %6, %cst_132 {dimension_numbers = #tpu.dot_dimension_numbers<[1], [0], [0], [1], [0, 0, 1, 1], [], []>} : vector<2x32xf32>, vector<32x128xf32>, vector<2x128xf32> -> vector<2x128xf32>
    %658 = arith.addf %656, %657 : vector<2x128xf32>
    %659 = vector.broadcast %8 : vector<1x128xf32> to vector<2x128xf32>
    %660 = arith.addf %658, %659 : vector<2x128xf32>
    %661 = vector.extract_strided_slice %660 {offsets = [0, 0], sizes = [2, 32], strides = [1, 1]} : vector<2x128xf32> to vector<2x32xf32>
    %662 = arith.negf %661 : vector<2x32xf32>
    %663 = math.exp %662 : vector<2x32xf32>
    %cst_133 = arith.constant 1.000000e+00 : f32
    %664 = vector.broadcast %cst_133 : f32 to vector<2x32xf32>
    %665 = arith.addf %664, %663 : vector<2x32xf32>
    %666 = arith.divf %664, %665 : vector<2x32xf32>
    %667 = vector.extract_strided_slice %660 {offsets = [0, 32], sizes = [2, 32], strides = [1, 1]} : vector<2x128xf32> to vector<2x32xf32>
    %668 = arith.negf %667 : vector<2x32xf32>
    %669 = math.exp %668 : vector<2x32xf32>
    %cst_134 = arith.constant 1.000000e+00 : f32
    %670 = vector.broadcast %cst_134 : f32 to vector<2x32xf32>
    %671 = arith.addf %670, %669 : vector<2x32xf32>
    %672 = arith.divf %670, %671 : vector<2x32xf32>
    %673 = vector.extract_strided_slice %660 {offsets = [0, 64], sizes = [2, 32], strides = [1, 1]} : vector<2x128xf32> to vector<2x32xf32>
    %674 = math.tanh %673 : vector<2x32xf32>
    %675 = vector.extract_strided_slice %660 {offsets = [0, 96], sizes = [2, 32], strides = [1, 1]} : vector<2x128xf32> to vector<2x32xf32>
    %676 = arith.negf %675 : vector<2x32xf32>
    %677 = math.exp %676 : vector<2x32xf32>
    %cst_135 = arith.constant 1.000000e+00 : f32
    %678 = vector.broadcast %cst_135 : f32 to vector<2x32xf32>
    %679 = arith.addf %678, %677 : vector<2x32xf32>
    %680 = arith.divf %678, %679 : vector<2x32xf32>
    %681 = arith.mulf %672, %647 : vector<2x32xf32>
    %682 = arith.mulf %666, %674 : vector<2x32xf32>
    %683 = arith.addf %681, %682 : vector<2x32xf32>
    %684 = math.tanh %683 : vector<2x32xf32>
    %685 = arith.mulf %680, %684 : vector<2x32xf32>
    %686 = vector.broadcast %648 : i32 to vector<2x1xi32>
    %687 = arith.cmpi slt, %686, %9 : vector<2x1xi32>
    %688 = vector.shape_cast %687 : vector<2x1xi1> to vector<2x1xi1>
    %689 = vector.broadcast %688 : vector<2x1xi1> to vector<2x32xi1>
    %690 = arith.select %689, %685, %644 : vector<2x32xi1>, vector<2x32xf32>
    %691 = vector.shape_cast %687 : vector<2x1xi1> to vector<2x1xi1>
    %692 = vector.broadcast %691 : vector<2x1xi1> to vector<2x32xi1>
    %693 = arith.select %692, %683, %647 : vector<2x32xi1>, vector<2x32xf32>
    %c7_i32_136 = arith.constant 7 : i32
    %c7_i32_137 = arith.constant 7 : i32
    %694 = arith.subi %c7_i32_137, %c7_i32_136 : i32
    %695 = arith.index_cast %694 : i32 to index
    %c0_138 = arith.constant 0 : index
    %c0_139 = arith.constant 0 : index
    %696 = vector.load %arg1[%695, %c0_138, %c0_139] : memref<8x2x1xi32, #tpu.memory_space<vmem>>, vector<1x2x1xi32>
    %697 = vector.shape_cast %696 : vector<1x2x1xi32> to vector<2x1xi32>
    %698 = vector.broadcast %697 : vector<2x1xi32> to vector<2x16xi32>
    %699 = arith.cmpi eq, %698, %10 : vector<2x16xi32>
    %700 = arith.extui %699 : vector<2x16xi1> to vector<2x16xi32>
    %701 = arith.sitofp %700 : vector<2x16xi32> to vector<2x16xf32>
    %cst_140 = arith.constant dense<0.000000e+00> : vector<2x128xf32>
    %702 = tpu.matmul %701, %4, %cst_140 {dimension_numbers = #tpu.dot_dimension_numbers<[1], [0], [0], [1], [0, 0, 1, 1], [], []>} : vector<2x16xf32>, vector<16x128xf32>, vector<2x128xf32> -> vector<2x128xf32>
    %cst_141 = arith.constant dense<0.000000e+00> : vector<2x128xf32>
    %703 = tpu.matmul %690, %6, %cst_141 {dimension_numbers = #tpu.dot_dimension_numbers<[1], [0], [0], [1], [0, 0, 1, 1], [], []>} : vector<2x32xf32>, vector<32x128xf32>, vector<2x128xf32> -> vector<2x128xf32>
    %704 = arith.addf %702, %703 : vector<2x128xf32>
    %705 = vector.broadcast %8 : vector<1x128xf32> to vector<2x128xf32>
    %706 = arith.addf %704, %705 : vector<2x128xf32>
    %707 = vector.extract_strided_slice %706 {offsets = [0, 0], sizes = [2, 32], strides = [1, 1]} : vector<2x128xf32> to vector<2x32xf32>
    %708 = arith.negf %707 : vector<2x32xf32>
    %709 = math.exp %708 : vector<2x32xf32>
    %cst_142 = arith.constant 1.000000e+00 : f32
    %710 = vector.broadcast %cst_142 : f32 to vector<2x32xf32>
    %711 = arith.addf %710, %709 : vector<2x32xf32>
    %712 = arith.divf %710, %711 : vector<2x32xf32>
    %713 = vector.extract_strided_slice %706 {offsets = [0, 32], sizes = [2, 32], strides = [1, 1]} : vector<2x128xf32> to vector<2x32xf32>
    %714 = arith.negf %713 : vector<2x32xf32>
    %715 = math.exp %714 : vector<2x32xf32>
    %cst_143 = arith.constant 1.000000e+00 : f32
    %716 = vector.broadcast %cst_143 : f32 to vector<2x32xf32>
    %717 = arith.addf %716, %715 : vector<2x32xf32>
    %718 = arith.divf %716, %717 : vector<2x32xf32>
    %719 = vector.extract_strided_slice %706 {offsets = [0, 64], sizes = [2, 32], strides = [1, 1]} : vector<2x128xf32> to vector<2x32xf32>
    %720 = math.tanh %719 : vector<2x32xf32>
    %721 = vector.extract_strided_slice %706 {offsets = [0, 96], sizes = [2, 32], strides = [1, 1]} : vector<2x128xf32> to vector<2x32xf32>
    %722 = arith.negf %721 : vector<2x32xf32>
    %723 = math.exp %722 : vector<2x32xf32>
    %cst_144 = arith.constant 1.000000e+00 : f32
    %724 = vector.broadcast %cst_144 : f32 to vector<2x32xf32>
    %725 = arith.addf %724, %723 : vector<2x32xf32>
    %726 = arith.divf %724, %725 : vector<2x32xf32>
    %727 = arith.mulf %718, %693 : vector<2x32xf32>
    %728 = arith.mulf %712, %720 : vector<2x32xf32>
    %729 = arith.addf %727, %728 : vector<2x32xf32>
    %730 = math.tanh %729 : vector<2x32xf32>
    %731 = arith.mulf %726, %730 : vector<2x32xf32>
    %732 = vector.broadcast %694 : i32 to vector<2x1xi32>
    %733 = arith.cmpi slt, %732, %9 : vector<2x1xi32>
    %734 = vector.shape_cast %733 : vector<2x1xi1> to vector<2x1xi1>
    %735 = vector.broadcast %734 : vector<2x1xi1> to vector<2x32xi1>
    %736 = arith.select %735, %731, %690 : vector<2x32xi1>, vector<2x32xf32>
    %737 = vector.shape_cast %733 : vector<2x1xi1> to vector<2x1xi1>
    %738 = vector.broadcast %737 : vector<2x1xi1> to vector<2x32xi1>
    %739 = arith.select %738, %729, %693 : vector<2x32xi1>, vector<2x32xf32>
    %c8_i32_145 = arith.constant 8 : i32
    %740 = tpu.concatenate %368, %736 in 1 : vector<2x32xf32>, vector<2x32xf32> -> vector<2x64xf32>
    %c0_146 = arith.constant 0 : index
    %c0_147 = arith.constant 0 : index
    %741 = vector.load %arg13[%c0_146, %c0_147] : memref<2x64xf32, #tpu.memory_space<vmem>>, vector<2x64xf32>
    tpu.vector_store %arg13[%c0_146, %c0_147], %740 {strides = array<i32>} : memref<2x64xf32, #tpu.memory_space<vmem>>, vector<2x64xf32>,
    %c0_148 = arith.constant 0 : index
    %c0_149 = arith.constant 0 : index
    %742 = vector.load %arg10[%c0_148, %c0_149] : memref<64x4xf32, #tpu.memory_space<vmem>>, vector<64x4xf32>
    %cst_150 = arith.constant dense<0.000000e+00> : vector<2x4xf32>
    %743 = tpu.matmul %740, %742, %cst_150 {dimension_numbers = #tpu.dot_dimension_numbers<[1], [0], [0], [1], [0, 0, 1, 1], [], []>} : vector<2x64xf32>, vector<64x4xf32>, vector<2x4xf32> -> vector<2x4xf32>
    %c0_151 = arith.constant 0 : index
    %c0_152 = arith.constant 0 : index
    %744 = vector.load %arg11[%c0_151, %c0_152] : memref<1x4xf32, #tpu.memory_space<vmem>>, vector<1x4xf32>
    %745 = vector.broadcast %744 : vector<1x4xf32> to vector<2x4xf32>
    %746 = arith.addf %743, %745 : vector<2x4xf32>
    %c0_153 = arith.constant 0 : index
    %c0_154 = arith.constant 0 : index
    %747 = vector.load %arg12[%c0_153, %c0_154] : memref<2x4xf32, #tpu.memory_space<vmem>>, vector<2x4xf32>
    tpu.vector_store %arg12[%c0_153, %c0_154], %746 {strides = array<i32>} : memref<2x4xf32, #tpu.memory_space<vmem>>, vector<2x4xf32>,
    return
  }
  func.func @transform_0(%arg0: i32) -> (i32, i32, i32) {
    %c0_i32 = arith.constant 0 : i32
    %c0_i32_0 = arith.constant 0 : i32
    %c0_i32_1 = arith.constant 0 : i32
    %c0_i32_2 = arith.constant 0 : i32
    return %c0_i32, %c0_i32_0, %c0_i32_1 : i32, i32, i32
  }
  func.func @transform_1(%arg0: i32) -> (i32, i32) {
    %c0_i32 = arith.constant 0 : i32
    %c0_i32_0 = arith.constant 0 : i32
    %c0_i32_1 = arith.constant 0 : i32
    return %c0_i32, %c0_i32_0 : i32, i32
  }
  func.func @transform_2(%arg0: i32) -> (i32, i32) {
    %c0_i32 = arith.constant 0 : i32
    %c0_i32_0 = arith.constant 0 : i32
    %c0_i32_1 = arith.constant 0 : i32
    return %c0_i32, %c0_i32_0 : i32, i32
  }
  func.func @transform_3(%arg0: i32) -> (i32, i32) {
    %c0_i32 = arith.constant 0 : i32
    %c0_i32_0 = arith.constant 0 : i32
    %c0_i32_1 = arith.constant 0 : i32
    return %c0_i32, %c0_i32_0 : i32, i32
  }
  func.func @transform_4(%arg0: i32) -> (i32, i32) {
    %c0_i32 = arith.constant 0 : i32
    %c0_i32_0 = arith.constant 0 : i32
    %c0_i32_1 = arith.constant 0 : i32
    return %c0_i32, %c0_i32_0 : i32, i32
  }
  func.func @transform_5(%arg0: i32) -> (i32, i32) {
    %c0_i32 = arith.constant 0 : i32
    %c0_i32_0 = arith.constant 0 : i32
    %c0_i32_1 = arith.constant 0 : i32
    return %c0_i32, %c0_i32_0 : i32, i32
  }
  func.func @transform_6(%arg0: i32) -> (i32, i32) {
    %c0_i32 = arith.constant 0 : i32
    %c0_i32_0 = arith.constant 0 : i32
    %c0_i32_1 = arith.constant 0 : i32
    return %c0_i32, %c0_i32_0 : i32, i32
  }
  func.func @transform_7(%arg0: i32) -> (i32, i32) {
    %c0_i32 = arith.constant 0 : i32
    %c0_i32_0 = arith.constant 0 : i32
    %c0_i32_1 = arith.constant 0 : i32
    return %c0_i32, %c0_i32_0 : i32, i32
  }
  func.func @transform_8(%arg0: i32) -> (i32, i32) {
    %c0_i32 = arith.constant 0 : i32
    %c0_i32_0 = arith.constant 0 : i32
    %c0_i32_1 = arith.constant 0 : i32
    return %c0_i32, %c0_i32_0 : i32, i32
  }
  func.func @transform_9(%arg0: i32) -> (i32, i32) {
    %c0_i32 = arith.constant 0 : i32
    %c0_i32_0 = arith.constant 0 : i32
    %c0_i32_1 = arith.constant 0 : i32
    return %c0_i32, %c0_i32_0 : i32, i32
  }
  func.func @transform_10(%arg0: i32) -> (i32, i32) {
    %c0_i32 = arith.constant 0 : i32
    %c0_i32_0 = arith.constant 0 : i32
    %c0_i32_1 = arith.constant 0 : i32
    return %c0_i32, %c0_i32_0 : i32, i32
  }
  func.func @transform_11(%arg0: i32) -> (i32, i32) {
    %c0_i32 = arith.constant 0 : i32
    %c0_i32_0 = arith.constant 0 : i32
    %c0_i32_1 = arith.constant 0 : i32
    return %c0_i32, %c0_i32_0 : i32, i32
  }
  func.func @transform_12(%arg0: i32) -> (i32, i32) {
    %c0_i32 = arith.constant 0 : i32
    %c0_i32_0 = arith.constant 0 : i32
    %c0_i32_1 = arith.constant 0 : i32
    return %c0_i32, %c0_i32_0 : i32, i32
  }
}

</mosaic_0001>

<bundles_post_ra>
// kernel: tpu_custom_call.1
= control target key start
LH: loop header
LB: loop body
LE: loop exit
PB: predicated region body
PF: predicated region fallthrough
CT: control target
= control target key end

     0   :  { %18 = vsyncpa [#allocation3], 0  ;;  %s2681_s0 = inlined_call_operand.vmem [shape: s32[8,2,1], index: 0, kind: input, shape index: {}]   ;;  %s2682_s1 = inlined_call_operand.vmem [shape: s32[2,1], index: 1, kind: input, shape index: {}]   ;;  %s2683_s2 = inlined_call_operand.vmem [shape: f32[16,32], index: 2, kind: input, shape index: {}]   ;;  %s2684_s3 = inlined_call_operand.vmem [shape: f32[32,128], index: 3, kind: input, shape index: {}]   ;;  %s2685_s4 = inlined_call_operand.vmem [shape: f32[32,128], index: 4, kind: input, shape index: {}]   ;;  %s2686_s5 = inlined_call_operand.vmem [shape: f32[1,128], index: 5, kind: input, shape index: {}]   ;;  %s2687_s6 = inlined_call_operand.hbm [shape: f32[32,128], index: 6, kind: input, shape index: {}]   ;;  %s2688_s7 = inlined_call_operand.hbm [shape: f32[32,128], index: 7, kind: input, shape index: {}]   ;;  %s2689_s8 = inlined_call_operand.vmem [shape: f32[1,128], index: 8, kind: input, shape index: {}]   ;;  %s2690_s9 = inlined_call_operand.vmem [shape: f32[64,4], index: 9, kind: input, shape index: {}]   ;;  %s2691_s10 = inlined_call_operand.vmem [shape: f32[1,4], index: 10, kind: input, shape index: {}]   ;;  %s2692_s11 = inlined_call_operand.hbm [shape: f32[2,4], index: 11, kind: output, shape index: {0}]   ;;  %s2693_s12 = inlined_call_operand.hbm [shape: f32[2,64], index: 12, kind: output, shape index: {1}]  }
   0x1   :  { %19 = vsyncpa [#allocation6], 0 }
   0x2   :  { %20 = vsyncpa [#allocation4], 0 }
   0x3   :  { %21 = vsyncpa [#allocation9], 0  ;;  %s38_s23 = sshll.u32 %s2687_s6, 4  ;;  %s2042_s24 = smov [#allocation2]   ;;  %s39_s23 = int_to_ptr.hbm [resolvable:$true] %s38_s23 }
   0x4   :  { %s40_s25 = sshll.u32 %s2042_s24, 4  ;;  %s51_s28 = sshll.u32 %s2688_s7, 4  ;;  %s41_s25 = int_to_ptr.vmem [resolvable:$true] %s40_s25  ;;  %s52_s28 = int_to_ptr.hbm [resolvable:$true] %s51_s28 }
   0x5   :  { %s2043_s29 = smov 128   ;;  %s2044_s30 = smov 8  }
   0x6   :  { %46 = dma.hbm_to_vmem [thread:$0]  %s39_s23, 512, %s41_s25, [#allocation3], %s2043_s29, %s2043_s29, %s2044_s30  }
   0x7   :  { %s2045_s13 = smov [#allocation5]  }
   0x8   :  { %s53_s14 = sshll.u32 %s2045_s13, 4  ;;  %s54_s14 = int_to_ptr.vmem [resolvable:$true] %s53_s14 }
   0x9   :  { %59 = dma.hbm_to_vmem [thread:$0]  %s52_s28, 512, %s54_s14, [#allocation6], %s2043_s29, %s2043_s29, %s2044_s30  }
   0xa   :  { %2034 = dma.done.wait [#allocation3], 512  }
   0xb   :  { %2035 = vsyncadd [#allocation3], 4294966784 }
   0xc   :  { %2036 = dma.done.wait [#allocation6], 512  }
   0xd   :  { %2037 = vsyncadd [#allocation6], 4294966784  ;;  %v2046_v0 = vmov 0   ;;  %v79_v1 = vld [vmem:[%s2684_s3 + $0x18] sm:$0xff]  ;;  %v78_v2 = vld [vmem:[%s2684_s3 + $0x10] sm:$0xff]  ;;  %vm80_vm1 = vcmask 261120   ;;  %v148_v17 = vlaneseq }
   0xe   :  { %1802 = vset.pattern.permute.xlu0 %v2046_v0  ;;  %1803 = vset.pattern.permute.xlu2 %v2046_v0  ;;  %v77_v3 = vld [vmem:[%s2684_s3 + $0x8] sm:$0xff]  ;;  %v150_v4 = vld [vmem:[%s2681_s0] sm:$0x3]  ;;  %v2147_v6 = vld [vmem:[%s2685_s4 + $0x18] sm:$0xff]  ;;  %v2047_v15 = vmov 0.0   ;;  %vm180_vm4 = vcmask 130048  }
   0xf   :  { %1804 = vset.pattern.permute.xlu1 %v2046_v0  ;;  %99 = vmatpush.msra.mxu0 %v79_v1  ;;  %v2141_v5 = vld [vmem:[%s2682_s1] sm:$0x3]  ;;  %v1733_v10 = vld [vmem:[%s2681_s0 + $0x2] sm:$0x3]  ;;  %v2168_v11 = vld [vmem:[%s2683_s2 + $0x8] sm:$0xff]  ;;  %v2202_v19 = vand.u32 127, %v148_v17 }
  0x10   :  { %152 = vperm.xlu0 %1802, %v150_v4   ;;  %vm245_vm0 = vcmp.gt.s32.totalorder %v2141_v5, 0  ;;  %v76_v7 = vld [vmem:[%s2684_s3] sm:$0xff]  ;;  %172 = vmatpush.msra.mxu2 %v2147_v6  ;;  %v2175_v12 = vld [vmem:[%s2685_s4 + $0x10] sm:$0xff]  ;;  %v2180_v13 = vld [vmem:[%s2685_s4 + $0x8] sm:$0xff]  ;;  %s2048_s18 = smov 64   ;;  %s2049_s19 = smov 32  }
  0x11   :  { %100 = vmatpush.msra.mxu0 %v78_v2  ;;  %v246_v8 = vsel %vm245_vm0, 1, %v2046_v0  ;;  %278 = vmatpush.msra.mxu3 %v2147_v6  ;;  %v2158_v9 = vld [vmem:[%s2683_s2] sm:$0xff]  ;;  %vm347_vm10 = vcmp.gt.s32.totalorder %v2141_v5, 1  ;;  %s2050_s28 = smov [#allocation8]   ;;  %s2051_s13 = smov [#allocation7]  }
  0x12   :  { %248 = vperm.xlu2 %1803, %v246_v8   ;;  %173 = vmatpush.msra.mxu2 %v2175_v12  ;;  %v2187_v14 = vld [vmem:[%s2685_s4] sm:$0xff]  ;;  %v348_v59 = vsel %vm347_vm10, 1, %v2046_v0  ;;  %s1708_s29 = sshll.u32 %s2050_s28, 4  ;;  %s1699_s6 = sshll.u32 %s2692_s11, 4  ;;  %s1709_s29 = int_to_ptr.vmem [resolvable:$true] %s1708_s29  ;;  %s1700_s6 = int_to_ptr.hbm [resolvable:$true] %s1699_s6 }
  0x13   :  { %101 = vmatpush.msra.mxu0 %v77_v3  ;;  %279 = vmatpush.msra.mxu3 %v2175_v12  ;;  %v2233_v26 = vld [vmem:[%s2686_s5] ss:$0 sm:$0xff] }
  0x14   :  { %174 = vmatpush.msra.mxu2 %v2180_v13 }
  0x15   :  { %102 = vmatpush.msra.mxu0 %v76_v7  ;;  %280 = vmatpush.msra.mxu3 %v2180_v13 }
  0x16   :  { %1726 = vmatmul.msk.f32.vlgmr.msra.gmra.mxu0 %vm80_vm1, %v2158_v9  ;;  %175 = vmatpush.msra.mxu2 %v2187_v14 }
  0x17   :  { %281 = vmatpush.msra.mxu3 %v2187_v14  ;;  %176 = vmatmul.f32.vlgmr.msra.gmra.mxu2 %v2047_v15 }
  0x19   :  { %380 = vmatpush.msrb.mxu3 %v2147_v6 }
  0x1a   :  { %256 = vperm.xlu2 %1803, %v1733_v10  }
  0x1b   :  { %381 = vmatpush.msrb.mxu3 %v2175_v12 }
  0x1d   :  { %382 = vmatpush.msrb.mxu3 %v2180_v13 }
  0x1e   :  { %1727 = vmatmul.msk.f32.gmra.mxu0 %vm80_vm1, %v2168_v11 }
  0x1f   :  { %383 = vmatpush.msrb.mxu3 %v2187_v14 }
  0x6c   :  { %v2198_v16 = vpop.permute.xlu2 %248 }
  0x6d   :  { %vm250_vm9 = vcmp.eq.s32.totalorder %v2198_v16, 1  ;;  %v1807_v16 = vld [vmem:[%s2691_s10] ss:$0 sm:$0xff] }
  0x74   :  { %v257_v21 = vpop.permute.xlu2 %256 }
  0x75   :  { %vm258_vm3 = vcmp.eq.s32.totalorder %v257_v21, %v2202_v19 }
  0x76   :  { %v2214_v24 = vsel %vm258_vm3, 1.0, %v2047_v15 }
  0x82   :  { %v153_v20 = vpop.permute.xlu0 %152 }
  0x83   :  { %vm154_vm2 = vcmp.eq.s32.totalorder %v153_v20, %v2202_v19 }
  0x84   :  { %v2209_v23 = vsel %vm154_vm2, 1.0, %v2047_v15  ;;  %vm449_vm2 = vcmp.gt.s32.totalorder %v2141_v5, 2 }
  0x93   :  { %v2200_v18 = vpop.f32.mrf.mxu0 }
  0x9a   :  { %v177_v25 = vpop.f32.mrf.mxu2 }
  0x9b   :  { %v2206_v22 = vpop.f32.mrf.mxu0 }
  0x9c   :  { %198 = vmatpush.msrb.mxu0 %v2206_v22  ;;  %303 = vmatpush.msrb.mxu2 %v2206_v22 }
  0x9e   :  { %199 = vmatpush.msrb.mxu0 %v2200_v18  ;;  %304 = vmatpush.msrb.mxu2 %v2200_v18 }
  0x9f   :  { %1731 = vmatmul.msk.f32.vlgmr.msrb.gmra.mxu0 %vm180_vm4, %v2209_v23  ;;  %1736 = vmatmul.msk.f32.vlgmr.msrb.gmra.mxu2 %vm180_vm4, %v2214_v24 }
  0xa0   :  { %507 = vmatpush.msra.mxu2 %v2206_v22  ;;  %405 = vmatpush.msra.mxu0 %v2206_v22 }
  0xa2   :  { %508 = vmatpush.msra.mxu2 %v2200_v18  ;;  %406 = vmatpush.msra.mxu0 %v2200_v18 }
  0xa4   :  { %711 = vmatpush.msrb.mxu2 %v2206_v22  ;;  %609 = vmatpush.msrb.mxu0 %v2206_v22 }
  0xa6   :  { %712 = vmatpush.msrb.mxu2 %v2200_v18  ;;  %610 = vmatpush.msrb.mxu0 %v2200_v18 }
 0x11c   :  { %v201_v27 = vpop.f32.mrf.mxu0 }
 0x11d   :  { %v202_v28 = vadd.f32 %v201_v27, %v177_v25 }
 0x11f   :  { %v207_v29 = vadd.f32 %v2233_v26, %v202_v28 }
 0x121   :  { %1808 = vtanh.f32 %v207_v29  ;;  %v1732_v31 = vmul.f32 -1.442695, %v207_v29 }
 0x122   :  { %v306_v54 = vpop.f32.mrf.mxu2 }
 0x123   :  { %1810 = vpow2.f32 %v1732_v31 }
 0x127   :  { %v1809_v30 = vpop.eup %1808 }
 0x128   :  { %230 = vrot.lane.b32.xlu0 %v1809_v30, %s2048_s18 }
 0x129   :  { %v1811_v32 = vpop.eup %1810 }
 0x12a   :  { %v211_v33 = vadd.f32 1.0, %v1811_v32  ;;  %v1738_v32 = vld [vmem:[%s2681_s0 + $0x4] sm:$0x3] }
 0x12c   :  { %1812 = vrcp.f32 %v211_v33  ;;  %v223_v39 = vand.u32 2147483648, %v211_v33  ;;  %vm217_vm6 = vweird.f32 %v211_v33  ;;  %v221_v40 = vand.u32 2147483647, %v211_v33 }
 0x12e   :  { %v224_v42 = vor.u32 1.1754944e-38, %v223_v39  ;;  %vm222_vm8 = vcmp.eq.f32.partialorder %v221_v40, 8.507059e+37 }
 0x132   :  { %v1813_v34 = vpop.eup %1812 }
 0x133   :  { %v213_v35 = vmul.f32 %v1813_v34, %v211_v33  ;;  %vm218_vm5 = vweird.f32 %v1813_v34 }
 0x134   :  { %vm219_vm7 = vmor %vm217_vm6, %vm218_vm5 }
 0x135   :  { %v214_v36 = vsub.f32 1.0, %v213_v35 }
 0x137   :  { %v215_v37 = vmul.f32 %v1813_v34, %v214_v36 }
 0x139   :  { %v216_v38 = vadd.f32 %v1813_v34, %v215_v37 }
 0x13b   :  { %v220_v41 = vsel %vm219_vm7, %v1813_v34, %v216_v38 }
 0x13c   :  { %v225_v44 = vsel %vm222_vm8, %v224_v42, %v220_v41 }
 0x13d   :  { %v228_v46 = vmul.f32 0.0, %v225_v44 }
 0x19a   :  { %v231_v43 = vpop.permute.xlu0 %230 }
 0x19b   :  { %v233_v45 = vmul.f32 %v231_v43, %v225_v44 }
 0x19d   :  { %235 = vrot.lane.b32.xlu1 %v233_v45, %s2049_s19  ;;  %v450_v45 = vsel %vm449_vm2, 1, %v2046_v0 }
 0x20f   :  { %v236_v47 = vpop.permute.xlu1 %235 }
 0x210   :  { %v238_v48 = vadd.f32 %v236_v47, %v228_v46 }
 0x212   :  { %1814 = vtanh.f32 %v238_v48  ;;  %v252_v27 = vsel %vm250_vm9, %v238_v48, 0.0 }
 0x218   :  { %v1815_v49 = vpop.eup %1814 }
 0x219   :  { %241 = vrot.lane.b32.xlu1 %v1815_v49, %s2048_s18 }
 0x28b   :  { %v242_v50 = vpop.permute.xlu1 %241 }
 0x28c   :  { %v244_v51 = vmul.f32 %v242_v50, %v225_v44 }
 0x28e   :  { %v251_v52 = vsel %vm250_vm9, %v244_v51, 0.0 }
 0x28f   :  { %262 = vrot.lane.b32.xlu0 %v251_v52, %s2049_s19 }
 0x301   :  { %v263_v53 = vpop.permute.xlu0 %262 }
 0x302   :  { %1735 = vmatmul.msk.f32.vlgmr.msra.gmra.mxu3 %vm80_vm1, %v263_v53 }
 0x303   :  { %584 = vmatpush.msra.mxu3 %v2147_v6 }
 0x305   :  { %585 = vmatpush.msra.mxu3 %v2175_v12 }
 0x307   :  { %586 = vmatpush.msra.mxu3 %v2180_v13 }
 0x309   :  { %587 = vmatpush.msra.mxu3 %v2187_v14 }
 0x385   :  { %v283_v55 = vpop.f32.mrf.mxu3 }
 0x386   :  { %v307_v56 = vadd.f32 %v306_v54, %v283_v55 }
 0x388   :  { %v309_v57 = vadd.f32 %v2233_v26, %v307_v56 }
 0x38a   :  { %1816 = vtanh.f32 %v309_v57  ;;  %v1737_v60 = vmul.f32 -1.442695, %v309_v57 }
 0x38c   :  { %1818 = vpow2.f32 %v1737_v60 }
 0x390   :  { %v1817_v58 = vpop.eup %1816 }
 0x391   :  { %332 = vrot.lane.b32.xlu1 %v1817_v58, %s2048_s18 }
 0x392   :  { %v1819_v61 = vpop.eup %1818 }
 0x393   :  { %v313_v62 = vadd.f32 1.0, %v1819_v61  ;;  %v1743_v61 = vld [vmem:[%s2681_s0 + $0x6] sm:$0x3] }
 0x395   :  { %1820 = vrcp.f32 %v313_v62  ;;  %v325_v7 = vand.u32 2147483648, %v313_v62  ;;  %vm319_vm12 = vweird.f32 %v313_v62  ;;  %v323_v8 = vand.u32 2147483647, %v313_v62 }
 0x397   :  { %v326_v17 = vor.u32 1.1754944e-38, %v325_v7  ;;  %vm324_vm14 = vcmp.eq.f32.partialorder %v323_v8, 8.507059e+37  ;;  %v113_v8 = vld [vmem:[#allocation2 + $0x18] sm:$0xff] }
 0x398   :  { %126 = vmatpush.msra.mxu1 %v113_v8 }
 0x399   :  { %350 = vperm.xlu1 %1804, %v348_v59  }
 0x39b   :  { %v1821_v63 = vpop.eup %1820 }
 0x39c   :  { %v315_v1 = vmul.f32 %v1821_v63, %v313_v62  ;;  %vm320_vm11 = vweird.f32 %v1821_v63 }
 0x39d   :  { %vm321_vm13 = vmor %vm319_vm12, %vm320_vm11  ;;  %vm551_vm11 = vcmp.gt.s32.totalorder %v2141_v5, 3 }
 0x39e   :  { %v316_v2 = vsub.f32 1.0, %v315_v1 }
 0x3a0   :  { %v317_v3 = vmul.f32 %v1821_v63, %v316_v2 }
 0x3a2   :  { %v318_v4 = vadd.f32 %v1821_v63, %v317_v3 }
 0x3a4   :  { %v322_v10 = vsel %vm321_vm13, %v1821_v63, %v318_v4 }
 0x3a5   :  { %v327_v21 = vsel %vm324_vm14, %v326_v17, %v322_v10  ;;  %v112_v10 = vld [vmem:[#allocation2 + $0x10] sm:$0xff]  ;;  %v111_v17 = vld [vmem:[#allocation2 + $0x8] sm:$0xff] }
 0x3a6   :  { %v330_v28 = vmul.f32 %v327_v21, %v252_v27  ;;  %127 = vmatpush.msra.mxu1 %v112_v10 }
 0x3a8   :  { %128 = vmatpush.msra.mxu1 %v111_v17 }
 0x403   :  { %v333_v20 = vpop.permute.xlu1 %332 }
 0x404   :  { %v335_v25 = vmul.f32 %v333_v20, %v327_v21  ;;  %v110_v20 = vld [vmem:[#allocation2] sm:$0xff] }
 0x405   :  { %129 = vmatpush.msra.mxu1 %v110_v20 }
 0x406   :  { %337 = vrot.lane.b32.xlu2 %v335_v25, %s2049_s19  ;;  %1728 = vmatmul.msk.f32.vlgmr.msra.gmra.mxu1 %vm80_vm1, %v2158_v9 }
 0x407   :  { %482 = vmatpush.msrb.mxu1 %v2147_v6 }
 0x409   :  { %483 = vmatpush.msrb.mxu1 %v2175_v12 }
 0x40b   :  { %v2259_v33 = vpop.permute.xlu1 %350  ;;  %484 = vmatpush.msrb.mxu1 %v2180_v13 }
 0x40c   :  { %vm352_vm15 = vcmp.eq.s32.totalorder %v2259_v33, 1  ;;  %v1659_v33 = vld [vmem:[%s2690_s9 + $0x28] sm:$0xff] }
 0x40d   :  { %485 = vmatpush.msrb.mxu1 %v2187_v14 }
 0x40e   :  { %1729 = vmatmul.msk.f32.gmra.mxu1 %vm80_vm1, %v2168_v11 }
 0x40f   :  { %686 = vmatpush.msra.mxu1 %v2147_v6 }
 0x411   :  { %687 = vmatpush.msra.mxu1 %v2175_v12 }
 0x413   :  { %688 = vmatpush.msra.mxu1 %v2180_v13 }
 0x415   :  { %689 = vmatpush.msra.mxu1 %v2187_v14 }
 0x460   :  { %v338_v29 = vpop.permute.xlu2 %337 }
 0x461   :  { %v340_v30 = vadd.f32 %v338_v29, %v330_v28 }
 0x463   :  { %1822 = vtanh.f32 %v340_v30  ;;  %v2291_v62 = vsel %vm352_vm15, %v340_v30, %v252_v27 }
 0x469   :  { %v1823_v31 = vpop.eup %1822 }
 0x46a   :  { %343 = vrot.lane.b32.xlu0 %v1823_v31, %s2048_s18 }
 0x472   :  { %358 = vperm.xlu0 %1802, %v1738_v32  }
 0x483   :  { %v2330_v11 = vpop.f32.mrf.mxu1 }
 0x48b   :  { %v2332_v27 = vpop.f32.mrf.mxu1 }
 0x4dc   :  { %v344_v34 = vpop.permute.xlu0 %343 }
 0x4dd   :  { %v346_v35 = vmul.f32 %v344_v34, %v327_v21 }
 0x4df   :  { %v2264_v36 = vsel %vm352_vm15, %v346_v35, %v251_v52 }
 0x4e0   :  { %364 = vrot.lane.b32.xlu2 %v2264_v36, %s2049_s19 }
 0x4e4   :  { %v359_v37 = vpop.permute.xlu0 %358 }
 0x4e5   :  { %vm360_vm0 = vcmp.eq.s32.totalorder %v359_v37, %v2202_v19 }
 0x4e6   :  { %v2270_v38 = vsel %vm360_vm0, 1.0, %v2047_v15 }
 0x4e7   :  { %1741 = vmatmul.msk.f32.vlgmr.msra.gmra.mxu0 %vm180_vm4, %v2270_v38 }
 0x4e8   :  { %813 = vmatpush.msra.mxu0 %v2206_v22 }
 0x4ea   :  { %814 = vmatpush.msra.mxu0 %v2200_v18 }
 0x53a   :  { %v365_v39 = vpop.permute.xlu2 %364 }
 0x53b   :  { %1740 = vmatmul.msk.f32.vlgmr.msrb.gmra.mxu3 %vm80_vm1, %v365_v39 }
 0x53c   :  { %788 = vmatpush.msrb.mxu3 %v2147_v6 }
 0x53e   :  { %789 = vmatpush.msrb.mxu3 %v2175_v12 }
 0x540   :  { %790 = vmatpush.msrb.mxu3 %v2180_v13 }
 0x542   :  { %791 = vmatpush.msrb.mxu3 %v2187_v14 }
 0x564   :  { %v408_v40 = vpop.f32.mrf.mxu0 }
 0x5be   :  { %v385_v41 = vpop.f32.mrf.mxu3 }
 0x5bf   :  { %v409_v42 = vadd.f32 %v408_v40, %v385_v41 }
 0x5c1   :  { %v411_v43 = vadd.f32 %v2233_v26, %v409_v42 }
 0x5c3   :  { %1824 = vtanh.f32 %v411_v43  ;;  %v1742_v46 = vmul.f32 -1.442695, %v411_v43 }
 0x5c5   :  { %1826 = vpow2.f32 %v1742_v46 }
 0x5c9   :  { %v1825_v44 = vpop.eup %1824 }
 0x5ca   :  { %434 = vrot.lane.b32.xlu1 %v1825_v44, %s2048_s18 }
 0x5cb   :  { %v1827_v47 = vpop.eup %1826 }
 0x5cc   :  { %v415_v48 = vadd.f32 1.0, %v1827_v47 }
 0x5ce   :  { %1828 = vrcp.f32 %v415_v48  ;;  %v427_v54 = vand.u32 2147483648, %v415_v48  ;;  %vm421_vm5 = vweird.f32 %v415_v48  ;;  %v425_v55 = vand.u32 2147483647, %v415_v48 }
 0x5d0   :  { %v428_v57 = vor.u32 1.1754944e-38, %v427_v54  ;;  %vm426_vm7 = vcmp.eq.f32.partialorder %v425_v55, 8.507059e+37 }
 0x5d2   :  { %452 = vperm.xlu1 %1804, %v450_v45  }
 0x5d4   :  { %v1829_v49 = vpop.eup %1828 }
 0x5d5   :  { %v417_v50 = vmul.f32 %v1829_v49, %v415_v48  ;;  %vm422_vm3 = vweird.f32 %v1829_v49 }
 0x5d6   :  { %vm423_vm6 = vmor %vm421_vm5, %vm422_vm3  ;;  %vm653_vm5 = vcmp.gt.s32.totalorder %v2141_v5, 4 }
 0x5d7   :  { %v418_v51 = vsub.f32 1.0, %v417_v50 }
 0x5d9   :  { %v419_v52 = vmul.f32 %v1829_v49, %v418_v51 }
 0x5db   :  { %v420_v53 = vadd.f32 %v1829_v49, %v419_v52  ;;  %v1748_v52 = vld [vmem:[%s2681_s0 + $0x8] sm:$0x3] }
 0x5dd   :  { %v424_v56 = vsel %vm423_vm6, %v1829_v49, %v420_v53 }
 0x5de   :  { %v429_v59 = vsel %vm426_vm7, %v428_v57, %v424_v56 }
 0x5df   :  { %v432_v63 = vmul.f32 %v429_v59, %v2291_v62 }
 0x63c   :  { %v435_v58 = vpop.permute.xlu1 %434 }
 0x63d   :  { %v437_v60 = vmul.f32 %v435_v58, %v429_v59 }
 0x63f   :  { %439 = vrot.lane.b32.xlu2 %v437_v60, %s2049_s19 }
 0x644   :  { %v2310_v21 = vpop.permute.xlu1 %452 }
 0x645   :  { %vm454_vm10 = vcmp.eq.s32.totalorder %v2310_v21, 1 }
 0x647   :  { %460 = vperm.xlu2 %1803, %v1743_v61  }
 0x699   :  { %v440_v1 = vpop.permute.xlu2 %439 }
 0x69a   :  { %v2294_v2 = vadd.f32 %v440_v1, %v432_v63 }
 0x69c   :  { %1830 = vtanh.f32 %v2294_v2  ;;  %v456_v47 = vsel %vm454_vm10, %v2294_v2, %v2291_v62  ;;  %v654_v2 = vsel %vm653_vm5, 1, %v2046_v0 }
 0x6a1   :  { %v461_v3 = vpop.permute.xlu2 %460 }
 0x6a2   :  { %v1831_v4 = vpop.eup %1830  ;;  %vm462_vm8 = vcmp.eq.s32.totalorder %v461_v3, %v2202_v19 }
 0x6a3   :  { %v2299_v7 = vsel %vm462_vm8, 1.0, %v2047_v15  ;;  %445 = vrot.lane.b32.xlu0 %v1831_v4, %s2048_s18 }
 0x6a4   :  { %1746 = vmatmul.msk.f32.vlgmr.msra.gmra.mxu2 %vm180_vm4, %v2299_v7 }
 0x6a5   :  { %915 = vmatpush.msra.mxu2 %v2206_v22 }
 0x6a7   :  { %916 = vmatpush.msra.mxu2 %v2200_v18 }
 0x715   :  { %v446_v18 = vpop.permute.xlu0 %445 }
 0x716   :  { %v448_v22 = vmul.f32 %v446_v18, %v429_v59 }
 0x718   :  { %v455_v9 = vsel %vm454_vm10, %v448_v22, %v2264_v36 }
 0x719   :  { %466 = vrot.lane.b32.xlu0 %v455_v9, %s2049_s19 }
 0x727   :  { %v510_v28 = vpop.f32.mrf.mxu2 }
 0x78b   :  { %v467_v25 = vpop.permute.xlu0 %466 }
 0x78c   :  { %1745 = vmatmul.msk.f32.vlgmr.msrb.gmra.mxu1 %vm80_vm1, %v467_v25 }
 0x78d   :  { %890 = vmatpush.msrb.mxu1 %v2147_v6  ;;  %v552_v6 = vsel %vm551_vm11, 1, %v2046_v0 }
 0x78f   :  { %891 = vmatpush.msrb.mxu1 %v2175_v12 }
 0x791   :  { %892 = vmatpush.msrb.mxu1 %v2180_v13 }
 0x793   :  { %893 = vmatpush.msrb.mxu1 %v2187_v14 }
 0x809   :  { %v487_v29 = vpop.f32.mrf.mxu1 }
 0x80a   :  { %v511_v30 = vadd.f32 %v510_v28, %v487_v29 }
 0x80c   :  { %v513_v31 = vadd.f32 %v2233_v26, %v511_v30 }
 0x80e   :  { %1832 = vtanh.f32 %v513_v31  ;;  %v1747_v12 = vmul.f32 -1.442695, %v513_v31 }
 0x810   :  { %1834 = vpow2.f32 %v1747_v12 }
 0x814   :  { %v1833_v32 = vpop.eup %1832 }
 0x815   :  { %536 = vrot.lane.b32.xlu1 %v1833_v32, %s2048_s18 }
 0x816   :  { %v1835_v13 = vpop.eup %1834 }
 0x817   :  { %v517_v14 = vadd.f32 1.0, %v1835_v13 }
 0x819   :  { %1836 = vrcp.f32 %v517_v14  ;;  %v529_v40 = vand.u32 2147483648, %v517_v14  ;;  %vm523_vm13 = vweird.f32 %v517_v14  ;;  %v527_v41 = vand.u32 2147483647, %v517_v14 }
 0x81b   :  { %v530_v43 = vor.u32 1.1754944e-38, %v529_v40  ;;  %vm528_vm0 = vcmp.eq.f32.partialorder %v527_v41, 8.507059e+37 }
 0x81d   :  { %554 = vperm.xlu1 %1804, %v552_v6   ;;  %v1753_v6 = vld [vmem:[%s2681_s0 + $0xa] sm:$0x3] }
 0x81f   :  { %v1837_v34 = vpop.eup %1836 }
 0x820   :  { %v519_v35 = vmul.f32 %v1837_v34, %v517_v14  ;;  %vm524_vm12 = vweird.f32 %v1837_v34 }
 0x821   :  { %vm525_vm14 = vmor %vm523_vm13, %vm524_vm12 }
 0x822   :  { %v520_v36 = vsub.f32 1.0, %v519_v35 }
 0x824   :  { %v521_v37 = vmul.f32 %v1837_v34, %v520_v36 }
 0x826   :  { %v522_v39 = vadd.f32 %v1837_v34, %v521_v37 }
 0x828   :  { %v526_v42 = vsel %vm525_vm14, %v1837_v34, %v522_v39  ;;  %vm755_vm14 = vcmp.gt.s32.totalorder %v2141_v5, 5 }
 0x829   :  { %v531_v45 = vsel %vm528_vm0, %v530_v43, %v526_v42 }
 0x82a   :  { %v534_v48 = vmul.f32 %v531_v45, %v456_v47 }
 0x887   :  { %v537_v44 = vpop.permute.xlu1 %536 }
 0x888   :  { %v539_v46 = vmul.f32 %v537_v44, %v531_v45 }
 0x88a   :  { %541 = vrot.lane.b32.xlu2 %v539_v46, %s2049_s19 }
 0x88f   :  { %v2347_v53 = vpop.permute.xlu1 %554 }
 0x890   :  { %vm556_vm2 = vcmp.eq.s32.totalorder %v2347_v53, 1 }
 0x8e4   :  { %v542_v49 = vpop.permute.xlu2 %541 }
 0x8e5   :  { %v544_v50 = vadd.f32 %v542_v49, %v534_v48  ;;  %v756_v49 = vsel %vm755_vm14, 1, %v2046_v0 }
 0x8e7   :  { %1838 = vtanh.f32 %v544_v50  ;;  %v2372_v12 = vsel %vm556_vm2, %v544_v50, %v456_v47  ;;  %v1763_v50 = vld [vmem:[%s2681_s0 + $0xe] sm:$0x3] }
 0x8ed   :  { %v1839_v51 = vpop.eup %1838 }
 0x8ee   :  { %547 = vrot.lane.b32.xlu0 %v1839_v51, %s2048_s18 }
 0x8f6   :  { %562 = vperm.xlu0 %1802, %v1748_v52  }
 0x960   :  { %v548_v54 = vpop.permute.xlu0 %547 }
 0x961   :  { %v550_v55 = vmul.f32 %v548_v54, %v531_v45 }
 0x963   :  { %v557_v56 = vsel %vm556_vm2, %v550_v55, %v455_v9 }
 0x964   :  { %568 = vrot.lane.b32.xlu2 %v557_v56, %s2049_s19 }
 0x968   :  { %v563_v57 = vpop.permute.xlu0 %562 }
 0x969   :  { %vm564_vm3 = vcmp.eq.s32.totalorder %v563_v57, %v2202_v19 }
 0x96a   :  { %v2355_v58 = vsel %vm564_vm3, 1.0, %v2047_v15 }
 0x96b   :  { %1751 = vmatmul.msk.f32.vlgmr.msrb.gmra.mxu0 %vm180_vm4, %v2355_v58 }
 0x96c   :  { %1000 = vmatpush.msrb.mxu0 %v2332_v27 }
 0x96e   :  { %1001 = vmatpush.msrb.mxu0 %v2330_v11 }
 0x9be   :  { %v569_v59 = vpop.permute.xlu2 %568 }
 0x9bf   :  { %1750 = vmatmul.msk.f32.vlgmr.msra.gmra.mxu3 %vm80_vm1, %v569_v59 }
 0x9e8   :  { %v612_v60 = vpop.f32.mrf.mxu0 }
 0xa42   :  { %v589_v61 = vpop.f32.mrf.mxu3 }
 0xa43   :  { %v613_v62 = vadd.f32 %v612_v60, %v589_v61 }
 0xa45   :  { %v615_v63 = vadd.f32 %v2233_v26, %v613_v62 }
 0xa47   :  { %1840 = vtanh.f32 %v615_v63  ;;  %v1752_v3 = vmul.f32 -1.442695, %v615_v63 }
 0xa49   :  { %1842 = vpow2.f32 %v1752_v3 }
 0xa4d   :  { %v1841_v1 = vpop.eup %1840 }
 0xa4e   :  { %638 = vrot.lane.b32.xlu1 %v1841_v1, %s2048_s18 }
 0xa4f   :  { %v1843_v4 = vpop.eup %1842 }
 0xa50   :  { %v619_v8 = vadd.f32 1.0, %v1843_v4 }
 0xa52   :  { %1844 = vrcp.f32 %v619_v8  ;;  %v631_v9 = vand.u32 2147483648, %v619_v8  ;;  %vm625_vm7 = vweird.f32 %v619_v8  ;;  %v629_v25 = vand.u32 2147483647, %v619_v8 }
 0xa54   :  { %v632_v29 = vor.u32 1.1754944e-38, %v631_v9  ;;  %vm630_vm11 = vcmp.eq.f32.partialorder %v629_v25, 8.507059e+37 }
 0xa56   :  { %656 = vperm.xlu1 %1804, %v654_v2  }
 0xa58   :  { %v1845_v10 = vpop.eup %1844 }
 0xa59   :  { %v621_v17 = vmul.f32 %v1845_v10, %v619_v8  ;;  %vm626_vm6 = vweird.f32 %v1845_v10 }
 0xa5a   :  { %vm627_vm8 = vmor %vm625_vm7, %vm626_vm6 }
 0xa5b   :  { %v622_v20 = vsub.f32 1.0, %v621_v17 }
 0xa5d   :  { %v623_v18 = vmul.f32 %v1845_v10, %v622_v20 }
 0xa5f   :  { %v624_v22 = vadd.f32 %v1845_v10, %v623_v18 }
 0xa61   :  { %v628_v28 = vsel %vm627_vm8, %v1845_v10, %v624_v22 }
 0xa62   :  { %v633_v31 = vsel %vm630_vm11, %v632_v29, %v628_v28  ;;  %v1758_v28 = vld [vmem:[%s2681_s0 + $0xc] sm:$0x3]  ;;  %s1710_s0 = sshll.u32 %s2693_s12, 4  ;;  %s1711_s0 = int_to_ptr.hbm [resolvable:$true] %s1710_s0 }
 0xa63   :  { %v636_v13 = vmul.f32 %v633_v31, %v2372_v12 }
 0xac0   :  { %v639_v30 = vpop.permute.xlu1 %638 }
 0xac1   :  { %v641_v32 = vmul.f32 %v639_v30, %v633_v31 }
 0xac3   :  { %643 = vrot.lane.b32.xlu2 %v641_v32, %s2049_s19 }
 0xac8   :  { %v2384_v39 = vpop.permute.xlu1 %656 }
 0xac9   :  { %vm658_vm13 = vcmp.eq.s32.totalorder %v2384_v39, 1 }
 0xacb   :  { %664 = vperm.xlu2 %1803, %v1753_v6  }
 0xb1d   :  { %v644_v14 = vpop.permute.xlu2 %643 }
 0xb1e   :  { %v646_v34 = vadd.f32 %v644_v14, %v636_v13  ;;  %v2483_v13 = vld [vmem:[%s2689_s8] ss:$0 sm:$0xff]  ;;  %s1697_s8 = sshll.u32 %s2051_s13, 4  ;;  %s1698_s8 = int_to_ptr.vmem [resolvable:$true] %s1697_s8 }
 0xb20   :  { %1846 = vtanh.f32 %v646_v34  ;;  %v2409_v20 = vsel %vm658_vm13, %v646_v34, %v2372_v12 }
 0xb25   :  { %v665_v35 = vpop.permute.xlu2 %664 }
 0xb26   :  { %v1847_v36 = vpop.eup %1846  ;;  %vm666_vm12 = vcmp.eq.s32.totalorder %v665_v35, %v2202_v19 }
 0xb27   :  { %v2377_v37 = vsel %vm666_vm12, 1.0, %v2047_v15  ;;  %649 = vrot.lane.b32.xlu0 %v1847_v36, %s2048_s18 }
 0xb28   :  { %1756 = vmatmul.msk.f32.vlgmr.msrb.gmra.mxu2 %vm180_vm4, %v2377_v37 }
 0xb29   :  { %1088 = vmatpush.msrb.mxu2 %v2332_v27 }
 0xb2b   :  { %1089 = vmatpush.msrb.mxu2 %v2330_v11 }
 0xb99   :  { %v650_v40 = vpop.permute.xlu0 %649 }
 0xb9a   :  { %v652_v41 = vmul.f32 %v650_v40, %v633_v31 }
 0xb9c   :  { %v659_v42 = vsel %vm658_vm13, %v652_v41, %v557_v56 }
 0xb9d   :  { %670 = vrot.lane.b32.xlu0 %v659_v42, %s2049_s19 }
 0xbab   :  { %v714_v44 = vpop.f32.mrf.mxu2 }
 0xc0f   :  { %v671_v43 = vpop.permute.xlu0 %670 }
 0xc10   :  { %1755 = vmatmul.msk.f32.vlgmr.msra.gmra.mxu1 %vm80_vm1, %v671_v43 }
 0xc8d   :  { %v691_v45 = vpop.f32.mrf.mxu1 }
 0xc8e   :  { %v715_v46 = vadd.f32 %v714_v44, %v691_v45 }
 0xc90   :  { %v717_v47 = vadd.f32 %v2233_v26, %v715_v46 }
 0xc92   :  { %1848 = vtanh.f32 %v717_v47  ;;  %v1757_v51 = vmul.f32 -1.442695, %v717_v47 }
 0xc94   :  { %1850 = vpow2.f32 %v1757_v51 }
 0xc98   :  { %v1849_v48 = vpop.eup %1848 }
 0xc99   :  { %740 = vrot.lane.b32.xlu1 %v1849_v48, %s2048_s18 }
 0xc9a   :  { %v1851_v52 = vpop.eup %1850 }
 0xc9b   :  { %v721_v54 = vadd.f32 1.0, %v1851_v52 }
 0xc9d   :  { %1852 = vrcp.f32 %v721_v54  ;;  %v733_v61 = vand.u32 2147483648, %v721_v54  ;;  %vm727_vm3 = vweird.f32 %v721_v54  ;;  %v731_v62 = vand.u32 2147483647, %v721_v54 }
 0xc9f   :  { %v734_v1 = vor.u32 1.1754944e-38, %v733_v61  ;;  %vm732_vm6 = vcmp.eq.f32.partialorder %v731_v62, 8.507059e+37 }
 0xca1   :  { %758 = vperm.xlu1 %1804, %v756_v49  }
 0xca3   :  { %v1853_v55 = vpop.eup %1852 }
 0xca4   :  { %v723_v56 = vmul.f32 %v1853_v55, %v721_v54  ;;  %vm728_vm0 = vweird.f32 %v1853_v55 }
 0xca5   :  { %vm729_vm5 = vmor %vm727_vm3, %vm728_vm0  ;;  %vm857_vm3 = vcmp.gt.s32.totalorder %v2141_v5, 6 }
 0xca6   :  { %v724_v57 = vsub.f32 1.0, %v723_v56 }
 0xca8   :  { %v725_v59 = vmul.f32 %v1853_v55, %v724_v57 }
 0xca9   :  { %868 = vperm.xlu1 %1804, %v1763_v50  }
 0xcaa   :  { %v726_v60 = vadd.f32 %v1853_v55, %v725_v59  ;;  %v858_v59 = vsel %vm857_vm3, 1, %v2046_v0 }
 0xcac   :  { %v730_v63 = vsel %vm729_vm5, %v1853_v55, %v726_v60 }
 0xcad   :  { %v735_v3 = vsel %vm732_vm6, %v734_v1, %v730_v63 }
 0xcae   :  { %v738_v18 = vmul.f32 %v735_v3, %v2409_v20 }
 0xd0b   :  { %v741_v2 = vpop.permute.xlu1 %740 }
 0xd0c   :  { %v743_v4 = vmul.f32 %v741_v2, %v735_v3 }
 0xd0e   :  { %745 = vrot.lane.b32.xlu2 %v743_v4, %s2049_s19 }
 0xd13   :  { %v2399_v8 = vpop.permute.xlu1 %758 }
 0xd14   :  { %vm760_vm8 = vcmp.eq.s32.totalorder %v2399_v8, 1 }
 0xd1b   :  { %v869_v10 = vpop.permute.xlu1 %868 }
 0xd1c   :  { %vm870_vm7 = vcmp.eq.s32.totalorder %v869_v10, %v2202_v19 }
 0xd1d   :  { %v1764_v17 = vsel %vm870_vm7, 1.0, %v2047_v15 }
 0xd1e   :  { %1766 = vmatmul.msk.f32.vlgmr.msra.gmra.mxu2 %vm180_vm4, %v1764_v17 }
 0xd1f   :  { %1258 = vmatpush.msra.mxu2 %v2332_v27 }
 0xd21   :  { %1259 = vmatpush.msra.mxu2 %v2330_v11 }
 0xd68   :  { %v746_v22 = vpop.permute.xlu2 %745 }
 0xd69   :  { %v2412_v9 = vadd.f32 %v746_v22, %v738_v18 }
 0xd6b   :  { %1854 = vtanh.f32 %v2412_v9  ;;  %v2496_v5 = vsel %vm760_vm8, %v2412_v9, %v2409_v20  ;;  %v1936_v20 = vld [vmem:[%s2682_s1] sm:$0x3] }
 0xd71   :  { %v1855_v25 = vpop.eup %1854 }
 0xd72   :  { %751 = vrot.lane.b32.xlu0 %v1855_v25, %s2048_s18 }
 0xd7a   :  { %766 = vperm.xlu0 %1802, %v1758_v28  }
 0xde4   :  { %v752_v29 = vpop.permute.xlu0 %751 }
 0xde5   :  { %v754_v30 = vmul.f32 %v752_v29, %v735_v3 }
 0xde7   :  { %v2422_v31 = vsel %vm760_vm8, %v754_v30, %v659_v42 }
 0xde8   :  { %772 = vrot.lane.b32.xlu2 %v2422_v31, %s2049_s19 }
 0xdec   :  { %v767_v32 = vpop.permute.xlu0 %766 }
 0xded   :  { %vm768_vm11 = vcmp.eq.s32.totalorder %v767_v32, %v2202_v19  ;;  %v2453_v19 = vld [vmem:[#allocation5 + $0x18] sm:$0xff] }
 0xdee   :  { %v1759_v6 = vsel %vm768_vm11, 1.0, %v2047_v15  ;;  %978 = vmatpush.msra.mxu3 %v2453_v19  ;;  %1066 = vmatpush.msra.mxu1 %v2453_v19 }
 0xdef   :  { %1761 = vmatmul.msk.f32.vlgmr.msra.gmra.mxu0 %vm180_vm4, %v1759_v6  ;;  %1771 = vmatmul.msk.f32.vlgmr.msrb.gmra.mxu2 %vm180_vm4, %v1759_v6 }
 0xdf0   :  { %1173 = vmatpush.msra.mxu0 %v2332_v27  ;;  %1428 = vmatpush.msrb.mxu2 %v2332_v27 }
 0xdf2   :  { %1174 = vmatpush.msra.mxu0 %v2330_v11  ;;  %1429 = vmatpush.msrb.mxu2 %v2330_v11 }
 0xdf7   :  { %1768 = vmatmul.msk.f32.vlgmr.msrb.gmra.mxu0 %vm180_vm4, %v1764_v17  ;;  %1777 = vmatmul.msk.f32.vlgmr.msra.gmra.mxu2 %vm180_vm4, %v2355_v58  ;;  %v2455_v58 = vld [vmem:[#allocation5 + $0x10] sm:$0xff] }
 0xdf8   :  { %1343 = vmatpush.msrb.mxu0 %v2332_v27  ;;  %1598 = vmatpush.msra.mxu2 %v2332_v27 }
 0xdf9   :  { %979 = vmatpush.msra.mxu3 %v2455_v58  ;;  %1067 = vmatpush.msra.mxu1 %v2455_v58 }
 0xdfa   :  { %1344 = vmatpush.msrb.mxu0 %v2330_v11  ;;  %1599 = vmatpush.msra.mxu2 %v2330_v11 }
 0xdff   :  { %1774 = vmatmul.msk.f32.vlgmr.msra.gmra.mxu0 %vm180_vm4, %v2377_v37  ;;  %1783 = vmatmul.msk.f32.vlgmr.msrb.gmra.mxu2 %vm180_vm4, %v2270_v38  ;;  %v2459_v38 = vld [vmem:[#allocation5 + $0x8] sm:$0xff] }
 0xe00   :  { %1513 = vmatpush.msra.mxu0 %v2332_v27  ;;  %980 = vmatpush.msra.mxu3 %v2459_v38 }
 0xe01   :  { %1068 = vmatpush.msra.mxu1 %v2459_v38 }
 0xe02   :  { %1514 = vmatpush.msra.mxu0 %v2330_v11 }
 0xe07   :  { %1780 = vmatmul.msk.f32.vlgmr.msrb.gmra.mxu0 %vm180_vm4, %v2299_v7  ;;  %1789 = vmatmul.msk.f32.vlgmr.msra.gmra.mxu2 %vm180_vm4, %v2209_v23  ;;  %v2463_v7 = vld [vmem:[#allocation5] sm:$0xff] }
 0xe08   :  { %981 = vmatpush.msra.mxu3 %v2463_v7  ;;  %1069 = vmatpush.msra.mxu1 %v2463_v7 }
 0xe0f   :  { %1786 = vmatmul.msk.f32.vlgmr.msra.gmra.mxu0 %vm180_vm4, %v2214_v24 }
 0xe42   :  { %v773_v23 = vpop.permute.xlu2 %772 }
 0xe43   :  { %1760 = vmatmul.msk.f32.vlgmr.msrb.gmra.mxu3 %vm80_vm1, %v773_v23 }
 0xe44   :  { %1151 = vmatpush.msrb.mxu3 %v2453_v19 }
 0xe46   :  { %1152 = vmatpush.msrb.mxu3 %v2455_v58 }
 0xe48   :  { %1153 = vmatpush.msrb.mxu3 %v2459_v38 }
 0xe4a   :  { %1154 = vmatpush.msrb.mxu3 %v2463_v7 }
 0xe4b   :  { %982 = vmatmul.f32.vlgmr.msra.gmra.mxu3 %v2047_v15 }
 0xe4c   :  { %1321 = vmatpush.msra.mxu3 %v2453_v19 }
 0xe4e   :  { %1322 = vmatpush.msra.mxu3 %v2455_v58 }
 0xe50   :  { %1323 = vmatpush.msra.mxu3 %v2459_v38 }
 0xe52   :  { %1324 = vmatpush.msra.mxu3 %v2463_v7 }
 0xe6c   :  { %v816_v24 = vpop.f32.mrf.mxu0 }
 0xe74   :  { %v1003_v15 = vpop.f32.mrf.mxu0 }
 0xec6   :  { %v793_v11 = vpop.f32.mrf.mxu3 }
 0xec7   :  { %v817_v27 = vadd.f32 %v816_v24, %v793_v11 }
 0xec9   :  { %v819_v12 = vadd.f32 %v2233_v26, %v817_v27 }
 0xecb   :  { %1856 = vtanh.f32 %v819_v12  ;;  %v1762_v40 = vmul.f32 -1.442695, %v819_v12 }
 0xece   :  { %v983_v14 = vpop.f32.mrf.mxu3 }
 0xecf   :  { %v1004_v34 = vadd.f32 %v1003_v15, %v983_v14 }
 0xed1   :  { %v1857_v35 = vpop.eup %1856  ;;  %v1009_v36 = vadd.f32 %v2483_v13, %v1004_v34 }
 0xed2   :  { %842 = vrot.lane.b32.xlu2 %v1857_v35, %s2048_s18 }
 0xed3   :  { %1858 = vtanh.f32 %v1009_v36  ;;  %v1769_v45 = vmul.f32 -1.442695, %v1009_v36 }
 0xed4   :  { %1860 = vpow2.f32 %v1762_v40 }
 0xed9   :  { %v1859_v37 = vpop.eup %1858 }
 0xeda   :  { %1032 = vrot.lane.b32.xlu0 %v1859_v37, %s2048_s18  ;;  %v1861_v26 = vpop.eup %1860  ;;  %v2537_v37 = vpop.f32.mrf.mxu2 }
 0xedb   :  { %v823_v41 = vadd.f32 1.0, %v1861_v26 }
 0xedd   :  { %1862 = vrcp.f32 %v823_v41  ;;  %v835_v48 = vand.u32 2147483648, %v823_v41  ;;  %vm829_vm12 = vweird.f32 %v823_v41  ;;  %v833_v49 = vand.u32 2147483647, %v823_v41 }
 0xede   :  { %1864 = vpow2.f32 %v1769_v45 }
 0xedf   :  { %v836_v52 = vor.u32 1.1754944e-38, %v835_v48  ;;  %vm834_vm0 = vcmp.eq.f32.partialorder %v833_v49, 8.507059e+37 }
 0xee2   :  { %v1091_v26 = vpop.f32.mrf.mxu2 }
 0xee3   :  { %v1863_v42 = vpop.eup %1862 }
 0xee4   :  { %v825_v43 = vmul.f32 %v1863_v42, %v823_v41  ;;  %vm830_vm4 = vweird.f32 %v1863_v42  ;;  %v1865_v50 = vpop.eup %1864 }
 0xee5   :  { %vm831_vm14 = vmor %vm829_vm12, %vm830_vm4  ;;  %v1013_v54 = vadd.f32 1.0, %v1865_v50  ;;  %vm959_vm4 = vcmp.gt.s32.totalorder %v1936_v20, 7 }
 0xee6   :  { %v826_v44 = vsub.f32 1.0, %v825_v43  ;;  %v960_v9 = vsel %vm959_vm4, 1, %v2046_v0 }
 0xee7   :  { %1866 = vrcp.f32 %v1013_v54  ;;  %v1025_v2 = vand.u32 2147483648, %v1013_v54  ;;  %vm1019_vm6 = vweird.f32 %v1013_v54  ;;  %v1023_v3 = vand.u32 2147483647, %v1013_v54 }
 0xee8   :  { %v827_v46 = vmul.f32 %v1863_v42, %v826_v44 }
 0xee9   :  { %v1026_v10 = vor.u32 1.1754944e-38, %v1025_v2  ;;  %vm1024_vm11 = vcmp.eq.f32.partialorder %v1023_v3, 8.507059e+37 }
 0xeea   :  { %v828_v47 = vadd.f32 %v1863_v42, %v827_v46 }
 0xeec   :  { %v832_v51 = vsel %vm831_vm14, %v1863_v42, %v828_v47 }
 0xeed   :  { %v837_v56 = vsel %vm834_vm0, %v836_v52, %v832_v51  ;;  %v1867_v60 = vpop.eup %1866 }
 0xeee   :  { %v1015_v61 = vmul.f32 %v1867_v60, %v1013_v54  ;;  %vm1020_vm5 = vweird.f32 %v1867_v60  ;;  %v840_v25 = vmul.f32 %v837_v56, %v2496_v5 }
 0xeef   :  { %vm1021_vm7 = vmor %vm1019_vm6, %vm1020_vm5 }
 0xef0   :  { %v1016_v62 = vsub.f32 1.0, %v1015_v61 }
 0xef2   :  { %v1017_v63 = vmul.f32 %v1867_v60, %v1016_v62 }
 0xef4   :  { %v1018_v1 = vadd.f32 %v1867_v60, %v1017_v63 }
 0xef6   :  { %v1022_v4 = vsel %vm1021_vm7, %v1867_v60, %v1018_v1 }
 0xef7   :  { %v1027_v18 = vsel %vm1024_vm11, %v1026_v10, %v1022_v4 }
 0xef8   :  { %v1030_v30 = vmul.f32 0.0, %v1027_v18 }
 0xf2c   :  { %v843_v55 = vpop.permute.xlu2 %842 }
 0xf2d   :  { %v845_v57 = vmul.f32 %v843_v55, %v837_v56 }
 0xf2f   :  { %847 = vrot.lane.b32.xlu1 %v845_v57, %s2049_s19 }
 0xf37   :  { %860 = vperm.xlu1 %1804, %v858_v59  }
 0xf4c   :  { %v1033_v17 = vpop.permute.xlu0 %1032 }
 0xf4d   :  { %v1035_v22 = vmul.f32 %v1033_v17, %v1027_v18 }
 0xf4f   :  { %1037 = vrot.lane.b32.xlu2 %v1035_v22, %s2049_s19  ;;  %v1176_v22 = vpop.f32.mrf.mxu0 }
 0xfa1   :  { %v848_v28 = vpop.permute.xlu1 %847 }
 0xfa2   :  { %v2499_v29 = vadd.f32 %v848_v28, %v840_v25 }
 0xfa4   :  { %1868 = vtanh.f32 %v2499_v29 }
 0xfa9   :  { %v1038_v32 = vpop.permute.xlu2 %1037  ;;  %v2511_v11 = vpop.permute.xlu1 %860 }
 0xfaa   :  { %v1869_v6 = vpop.eup %1868  ;;  %v2502_v23 = vadd.f32 %v1038_v32, %v1030_v30  ;;  %vm862_vm12 = vcmp.eq.s32.totalorder %v2511_v11, 1 }
 0xfab   :  { %853 = vrot.lane.b32.xlu0 %v1869_v6, %s2048_s18 }
 0xfac   :  { %1870 = vtanh.f32 %v2502_v23 }
 0xfb2   :  { %v1871_v24 = vpop.eup %1870 }
 0xfb3   :  { %1043 = vrot.lane.b32.xlu2 %v1871_v24, %s2048_s18  ;;  %962 = vperm.xlu0 %1802, %v960_v9  }
0x100d   :  { %v1044_v14 = vpop.permute.xlu2 %1043 }
0x100e   :  { %v1046_v0 = vmul.f32 %v1044_v14, %v1027_v18 }
0x101d   :  { %v854_v27 = vpop.permute.xlu0 %853 }
0x101e   :  { %v856_v12 = vmul.f32 %v854_v27, %v837_v56 }
0x1020   :  { %v2517_v15 = vsel %vm862_vm12, %v856_v12, %v2422_v31 }
0x1021   :  { %874 = vrot.lane.b32.xlu1 %v2517_v15, %s2049_s19 }
0x1025   :  { %v2521_v34 = vpop.permute.xlu0 %962 }
0x1026   :  { %vm964_vm14 = vcmp.eq.s32.totalorder %v2521_v34, 1  ;;  %v1658_v34 = vld [vmem:[%s2690_s9 + $0x20] sm:$0xff] }
0x1027   :  { %v1047_v35 = vsel %vm964_vm14, %v1046_v0, 0.0  ;;  %v1048_v62 = vsel %vm964_vm14, %v2502_v23, 0.0 }
0x1028   :  { %1050 = vrot.lane.b32.xlu2 %v1047_v35, %s2049_s19 }
0x1082   :  { %v1051_v31 = vpop.permute.xlu2 %1050 }
0x1093   :  { %v875_v36 = vpop.permute.xlu1 %874 }
0x1094   :  { %1765 = vmatmul.msk.f32.vlgmr.msrb.gmra.mxu1 %vm80_vm1, %v875_v36 }
0x1095   :  { %1236 = vmatpush.msrb.mxu1 %v2453_v19 }
0x1097   :  { %1237 = vmatpush.msrb.mxu1 %v2455_v58 }
0x1099   :  { %1238 = vmatpush.msrb.mxu1 %v2459_v38 }
0x109b   :  { %1239 = vmatpush.msrb.mxu1 %v2463_v7 }
0x109c   :  { %1770 = vmatmul.msk.f32.vlgmr.msra.gmra.mxu1 %vm80_vm1, %v1051_v31 }
0x109d   :  { %1406 = vmatpush.msra.mxu1 %v2453_v19 }
0x109f   :  { %1407 = vmatpush.msra.mxu1 %v2455_v58 }
0x10a1   :  { %1408 = vmatpush.msra.mxu1 %v2459_v38 }
0x10a3   :  { %1409 = vmatpush.msra.mxu1 %v2463_v7 }
0x1111   :  { %v2539_v40 = vpop.f32.mrf.mxu1 }
0x1119   :  { %v1071_v41 = vpop.f32.mrf.mxu1 }
0x111a   :  { %v1092_v42 = vadd.f32 %v1091_v26, %v1071_v41 }
0x111c   :  { %v1094_v43 = vadd.f32 %v2483_v13, %v1092_v42 }
0x111e   :  { %1872 = vtanh.f32 %v1094_v43  ;;  %v1772_v45 = vmul.f32 -1.442695, %v1094_v43 }
0x1120   :  { %1874 = vpow2.f32 %v1772_v45 }
0x1124   :  { %v1873_v44 = vpop.eup %1872 }
0x1125   :  { %1117 = vrot.lane.b32.xlu0 %v1873_v44, %s2048_s18 }
0x1126   :  { %v1875_v46 = vpop.eup %1874 }
0x1127   :  { %v1098_v47 = vadd.f32 1.0, %v1875_v46 }
0x1129   :  { %1876 = vrcp.f32 %v1098_v47  ;;  %v1110_v54 = vand.u32 2147483648, %v1098_v47  ;;  %vm1104_vm3 = vweird.f32 %v1098_v47  ;;  %v1108_v55 = vand.u32 2147483647, %v1098_v47 }
0x112b   :  { %v1111_v57 = vor.u32 1.1754944e-38, %v1110_v54  ;;  %vm1109_vm6 = vcmp.eq.f32.partialorder %v1108_v55, 8.507059e+37 }
0x112f   :  { %v1877_v48 = vpop.eup %1876 }
0x1130   :  { %v1100_v49 = vmul.f32 %v1877_v48, %v1098_v47  ;;  %vm1105_vm0 = vweird.f32 %v1877_v48 }
0x1131   :  { %vm1106_vm5 = vmor %vm1104_vm3, %vm1105_vm0 }
0x1132   :  { %v1101_v50 = vsub.f32 1.0, %v1100_v49 }
0x1134   :  { %v1102_v51 = vmul.f32 %v1877_v48, %v1101_v50 }
0x1136   :  { %v1103_v52 = vadd.f32 %v1877_v48, %v1102_v51 }
0x1138   :  { %v1107_v56 = vsel %vm1106_vm5, %v1877_v48, %v1103_v52  ;;  %v1261_v52 = vpop.f32.mrf.mxu2 }
0x1139   :  { %v1112_v60 = vsel %vm1109_vm6, %v1111_v57, %v1107_v56 }
0x113a   :  { %v1115_v63 = vmul.f32 %v1112_v60, %v1048_v62 }
0x1197   :  { %v1118_v59 = vpop.permute.xlu0 %1117 }
0x1198   :  { %v1120_v61 = vmul.f32 %v1118_v59, %v1112_v60 }
0x119a   :  { %1122 = vrot.lane.b32.xlu1 %v1120_v61, %s2049_s19 }
0x120c   :  { %v1123_v1 = vpop.permute.xlu1 %1122 }
0x120d   :  { %v1125_v2 = vadd.f32 %v1123_v1, %v1115_v63 }
0x120f   :  { %1878 = vtanh.f32 %v1125_v2  ;;  %v1133_v43 = vsel %vm862_vm12, %v1125_v2, %v1048_v62 }
0x1215   :  { %v1879_v3 = vpop.eup %1878 }
0x1216   :  { %1128 = vrot.lane.b32.xlu2 %v1879_v3, %s2048_s18 }
0x1270   :  { %v1129_v4 = vpop.permute.xlu2 %1128 }
0x1271   :  { %v1131_v10 = vmul.f32 %v1129_v4, %v1112_v60 }
0x1273   :  { %v1132_v17 = vsel %vm862_vm12, %v1131_v10, %v1047_v35 }
0x1274   :  { %1135 = vrot.lane.b32.xlu0 %v1132_v17, %s2049_s19 }
0x12e6   :  { %v1136_v18 = vpop.permute.xlu0 %1135 }
0x12e7   :  { %1773 = vmatmul.msk.f32.vlgmr.msrb.gmra.mxu3 %vm80_vm1, %v1136_v18 }
0x12e8   :  { %1491 = vmatpush.msrb.mxu3 %v2453_v19 }
0x12ea   :  { %1492 = vmatpush.msrb.mxu3 %v2455_v58 }
0x12ec   :  { %1493 = vmatpush.msrb.mxu3 %v2459_v38 }
0x12ee   :  { %1494 = vmatpush.msrb.mxu3 %v2463_v7 }
0x136a   :  { %v1156_v25 = vpop.f32.mrf.mxu3 }
0x136b   :  { %v1177_v28 = vadd.f32 %v1176_v22, %v1156_v25 }
0x136d   :  { %v1179_v30 = vadd.f32 %v2483_v13, %v1177_v28 }
0x136f   :  { %1880 = vtanh.f32 %v1179_v30  ;;  %v1775_v6 = vmul.f32 -1.442695, %v1179_v30 }
0x1371   :  { %1882 = vpow2.f32 %v1775_v6 }
0x1375   :  { %v1881_v32 = vpop.eup %1880 }
0x1376   :  { %1202 = vrot.lane.b32.xlu1 %v1881_v32, %s2048_s18 }
0x1377   :  { %v1883_v23 = vpop.eup %1882 }
0x1378   :  { %v1183_v20 = vadd.f32 1.0, %v1883_v23 }
0x137a   :  { %1884 = vrcp.f32 %v1183_v20  ;;  %v1195_v0 = vand.u32 2147483648, %v1183_v20  ;;  %vm1189_vm11 = vweird.f32 %v1183_v20  ;;  %v1193_v35 = vand.u32 2147483647, %v1183_v20 }
0x137c   :  { %v1196_v31 = vor.u32 1.1754944e-38, %v1195_v0  ;;  %vm1194_vm0 = vcmp.eq.f32.partialorder %v1193_v35, 8.507059e+37 }
0x1380   :  { %v1885_v9 = vpop.eup %1884 }
0x1381   :  { %v1185_v24 = vmul.f32 %v1885_v9, %v1183_v20  ;;  %vm1190_vm7 = vweird.f32 %v1885_v9 }
0x1382   :  { %vm1191_vm4 = vmor %vm1189_vm11, %vm1190_vm7 }
0x1383   :  { %v1186_v27 = vsub.f32 1.0, %v1185_v24 }
0x1385   :  { %v1187_v12 = vmul.f32 %v1885_v9, %v1186_v27 }
0x1387   :  { %v1188_v14 = vadd.f32 %v1885_v9, %v1187_v12 }
0x1389   :  { %v1192_v36 = vsel %vm1191_vm4, %v1885_v9, %v1188_v14  ;;  %v1346_v9 = vpop.f32.mrf.mxu0 }
0x138a   :  { %v1197_v41 = vsel %vm1194_vm0, %v1196_v31, %v1192_v36 }
0x138b   :  { %v1200_v44 = vmul.f32 %v1197_v41, %v1133_v43 }
0x13e8   :  { %v1203_v26 = vpop.permute.xlu1 %1202 }
0x13e9   :  { %v1205_v42 = vmul.f32 %v1203_v26, %v1197_v41 }
0x13eb   :  { %1207 = vrot.lane.b32.xlu2 %v1205_v42, %s2049_s19 }
0x1445   :  { %v1208_v45 = vpop.permute.xlu2 %1207 }
0x1446   :  { %v1210_v46 = vadd.f32 %v1208_v45, %v1200_v44 }
0x1448   :  { %1886 = vtanh.f32 %v1210_v46  ;;  %v1218_v18 = vsel %vm760_vm8, %v1210_v46, %v1133_v43 }
0x144e   :  { %v1887_v47 = vpop.eup %1886 }
0x144f   :  { %1213 = vrot.lane.b32.xlu0 %v1887_v47, %s2048_s18 }
0x14c1   :  { %v1214_v48 = vpop.permute.xlu0 %1213 }
0x14c2   :  { %v1216_v49 = vmul.f32 %v1214_v48, %v1197_v41 }
0x14c4   :  { %v1217_v50 = vsel %vm760_vm8, %v1216_v49, %v1132_v17 }
0x14c5   :  { %1220 = vrot.lane.b32.xlu1 %v1217_v50, %s2049_s19 }
0x1537   :  { %v1221_v51 = vpop.permute.xlu1 %1220 }
0x1538   :  { %1776 = vmatmul.msk.f32.vlgmr.msrb.gmra.mxu1 %vm80_vm1, %v1221_v51 }
0x1539   :  { %1576 = vmatpush.msrb.mxu1 %v2453_v19 }
0x153b   :  { %1577 = vmatpush.msrb.mxu1 %v2455_v58 }
0x153d   :  { %1578 = vmatpush.msrb.mxu1 %v2459_v38 }
0x153f   :  { %1579 = vmatpush.msrb.mxu1 %v2463_v7 }
0x15b5   :  { %v1241_v54 = vpop.f32.mrf.mxu1 }
0x15b6   :  { %v1262_v55 = vadd.f32 %v1261_v52, %v1241_v54 }
0x15b8   :  { %v1264_v56 = vadd.f32 %v2483_v13, %v1262_v55 }
0x15ba   :  { %1888 = vtanh.f32 %v1264_v56  ;;  %v1778_v59 = vmul.f32 -1.442695, %v1264_v56 }
0x15bc   :  { %1890 = vpow2.f32 %v1778_v59 }
0x15c0   :  { %v1889_v57 = vpop.eup %1888 }
0x15c1   :  { %1287 = vrot.lane.b32.xlu2 %v1889_v57, %s2048_s18 }
0x15c2   :  { %v1891_v60 = vpop.eup %1890 }
0x15c3   :  { %v1268_v61 = vadd.f32 1.0, %v1891_v60 }
0x15c5   :  { %1892 = vrcp.f32 %v1268_v61  ;;  %v1280_v7 = vand.u32 2147483648, %v1268_v61  ;;  %vm1274_vm5 = vweird.f32 %v1268_v61  ;;  %v1278_v1 = vand.u32 2147483647, %v1268_v61 }
0x15c7   :  { %v1281_v3 = vor.u32 1.1754944e-38, %v1280_v7  ;;  %vm1279_vm7 = vcmp.eq.f32.partialorder %v1278_v1, 8.507059e+37 }
0x15cb   :  { %v1893_v19 = vpop.eup %1892 }
0x15cc   :  { %v1270_v58 = vmul.f32 %v1893_v19, %v1268_v61  ;;  %vm1275_vm3 = vweird.f32 %v1893_v19  ;;  %v1431_v61 = vpop.f32.mrf.mxu2 }
0x15cd   :  { %vm1276_vm6 = vmor %vm1274_vm5, %vm1275_vm3 }
0x15ce   :  { %v1271_v62 = vsub.f32 1.0, %v1270_v58 }
0x15d0   :  { %v1272_v38 = vmul.f32 %v1893_v19, %v1271_v62 }
0x15d2   :  { %v1273_v63 = vadd.f32 %v1893_v19, %v1272_v38 }
0x15d4   :  { %v1277_v2 = vsel %vm1276_vm6, %v1893_v19, %v1273_v63 }
0x15d5   :  { %v1282_v10 = vsel %vm1279_vm7, %v1281_v3, %v1277_v2 }
0x15d6   :  { %v1285_v22 = vmul.f32 %v1282_v10, %v1218_v18 }
0x161b   :  { %v1288_v4 = vpop.permute.xlu2 %1287 }
0x161c   :  { %v1290_v17 = vmul.f32 %v1288_v4, %v1282_v10 }
0x161e   :  { %1292 = vrot.lane.b32.xlu0 %v1290_v17, %s2049_s19 }
0x1690   :  { %v1293_v25 = vpop.permute.xlu0 %1292 }
0x1691   :  { %v1295_v28 = vadd.f32 %v1293_v25, %v1285_v22 }
0x1693   :  { %1894 = vtanh.f32 %v1295_v28 }
0x1699   :  { %v1895_v30 = vpop.eup %1894 }
0x169a   :  { %1298 = vrot.lane.b32.xlu1 %v1895_v30, %s2048_s18 }
0x170c   :  { %v1299_v32 = vpop.permute.xlu1 %1298 }
0x170d   :  { %v1301_v6 = vmul.f32 %v1299_v32, %v1282_v10 }
0x170f   :  { %v1302_v23 = vsel %vm658_vm13, %v1301_v6, %v1217_v50  ;;  %v1303_v50 = vsel %vm658_vm13, %v1295_v28, %v1218_v18 }
0x1710   :  { %1305 = vrot.lane.b32.xlu2 %v1302_v23, %s2049_s19 }
0x176a   :  { %v1306_v20 = vpop.permute.xlu2 %1305 }
0x176b   :  { %1779 = vmatmul.msk.f32.vlgmr.msra.gmra.mxu3 %vm80_vm1, %v1306_v20 }
0x17ee   :  { %v1326_v8 = vpop.f32.mrf.mxu3 }
0x17ef   :  { %v1347_v24 = vadd.f32 %v1346_v9, %v1326_v8 }
0x17f1   :  { %v1349_v27 = vadd.f32 %v2483_v13, %v1347_v24 }
0x17f3   :  { %1896 = vtanh.f32 %v1349_v27  ;;  %v1781_v14 = vmul.f32 -1.442695, %v1349_v27 }
0x17f5   :  { %1898 = vpow2.f32 %v1781_v14 }
0x17f9   :  { %v1897_v12 = vpop.eup %1896 }
0x17fa   :  { %1372 = vrot.lane.b32.xlu0 %v1897_v12, %s2048_s18 }
0x17fb   :  { %v1899_v0 = vpop.eup %1898 }
0x17fc   :  { %v1353_v35 = vadd.f32 1.0, %v1899_v0  ;;  %v1516_v0 = vpop.f32.mrf.mxu0 }
0x17fe   :  { %1900 = vrcp.f32 %v1353_v35  ;;  %v1365_v43 = vand.u32 2147483648, %v1353_v35  ;;  %vm1359_vm11 = vweird.f32 %v1353_v35  ;;  %v1363_v44 = vand.u32 2147483647, %v1353_v35 }
0x1800   :  { %v1366_v46 = vor.u32 1.1754944e-38, %v1365_v43  ;;  %vm1364_vm0 = vcmp.eq.f32.partialorder %v1363_v44, 8.507059e+37 }
0x1804   :  { %v1901_v36 = vpop.eup %1900 }
0x1805   :  { %v1355_v31 = vmul.f32 %v1901_v36, %v1353_v35  ;;  %vm1360_vm8 = vweird.f32 %v1901_v36 }
0x1806   :  { %vm1361_vm4 = vmor %vm1359_vm11, %vm1360_vm8 }
0x1807   :  { %v1356_v26 = vsub.f32 1.0, %v1355_v31 }
0x1809   :  { %v1357_v41 = vmul.f32 %v1901_v36, %v1356_v26 }
0x180b   :  { %v1358_v42 = vadd.f32 %v1901_v36, %v1357_v41 }
0x180d   :  { %v1362_v45 = vsel %vm1361_vm4, %v1901_v36, %v1358_v42 }
0x180e   :  { %v1367_v48 = vsel %vm1364_vm0, %v1366_v46, %v1362_v45 }
0x180f   :  { %v1370_v51 = vmul.f32 %v1367_v48, %v1303_v50 }
0x186c   :  { %v1373_v47 = vpop.permute.xlu0 %1372 }
0x186d   :  { %v1375_v49 = vmul.f32 %v1373_v47, %v1367_v48 }
0x186f   :  { %1377 = vrot.lane.b32.xlu1 %v1375_v49, %s2049_s19 }
0x18e1   :  { %v1378_v52 = vpop.permute.xlu1 %1377 }
0x18e2   :  { %v1380_v54 = vadd.f32 %v1378_v52, %v1370_v51 }
0x18e4   :  { %1902 = vtanh.f32 %v1380_v54  ;;  %v1388_v6 = vsel %vm556_vm2, %v1380_v54, %v1303_v50  ;;  %v919_v50 = vadd.f32 %v2537_v37, %v2539_v40  ;;  %v1937_v54 = vld [vmem:[%s2686_s5] ss:$0 sm:$0xff] }
0x18ea   :  { %v1903_v55 = vpop.eup %1902 }
0x18eb   :  { %1383 = vrot.lane.b32.xlu2 %v1903_v55, %s2048_s18  ;;  %v921_v55 = vadd.f32 %v1937_v54, %v919_v50 }
0x1945   :  { %v1384_v56 = vpop.permute.xlu2 %1383 }
0x1946   :  { %v1386_v57 = vmul.f32 %v1384_v56, %v1367_v48 }
0x1948   :  { %v1387_v59 = vsel %vm556_vm2, %v1386_v57, %v1302_v23 }
0x1949   :  { %1390 = vrot.lane.b32.xlu0 %v1387_v59, %s2049_s19 }
0x19bb   :  { %v1391_v60 = vpop.permute.xlu0 %1390 }
0x19bc   :  { %1782 = vmatmul.msk.f32.vlgmr.msra.gmra.mxu1 %vm80_vm1, %v1391_v60 }
0x1a39   :  { %v1411_v39 = vpop.f32.mrf.mxu1 }
0x1a3a   :  { %v1432_v19 = vadd.f32 %v1431_v61, %v1411_v39 }
0x1a3c   :  { %v1434_v58 = vadd.f32 %v2483_v13, %v1432_v19 }
0x1a3e   :  { %1904 = vtanh.f32 %v1434_v58  ;;  %v1784_v38 = vmul.f32 -1.442695, %v1434_v58  ;;  %v1767_v58 = vmul.f32 -1.442695, %v921_v55 }
0x1a40   :  { %1906 = vpow2.f32 %v1784_v38 }
0x1a44   :  { %v1905_v62 = vpop.eup %1904 }
0x1a45   :  { %1457 = vrot.lane.b32.xlu1 %v1905_v62, %s2048_s18 }
0x1a46   :  { %v1907_v63 = vpop.eup %1906 }
0x1a47   :  { %v1438_v7 = vadd.f32 1.0, %v1907_v63 }
0x1a49   :  { %1908 = vrcp.f32 %v1438_v7  ;;  %v1450_v17 = vand.u32 2147483648, %v1438_v7  ;;  %vm1444_vm3 = vweird.f32 %v1438_v7  ;;  %v1448_v18 = vand.u32 2147483647, %v1438_v7 }
0x1a4b   :  { %v1451_v25 = vor.u32 1.1754944e-38, %v1450_v17  ;;  %vm1449_vm6 = vcmp.eq.f32.partialorder %v1448_v18, 8.507059e+37 }
0x1a4f   :  { %v1909_v1 = vpop.eup %1908 }
0x1a50   :  { %v1440_v2 = vmul.f32 %v1909_v1, %v1438_v7  ;;  %vm1445_vm13 = vweird.f32 %v1909_v1 }
0x1a51   :  { %vm1446_vm5 = vmor %vm1444_vm3, %vm1445_vm13 }
0x1a52   :  { %v1441_v3 = vsub.f32 1.0, %v1440_v2 }
0x1a54   :  { %v1442_v4 = vmul.f32 %v1909_v1, %v1441_v3 }
0x1a56   :  { %v1443_v10 = vadd.f32 %v1909_v1, %v1442_v4 }
0x1a58   :  { %v1447_v22 = vsel %vm1446_vm5, %v1909_v1, %v1443_v10 }
0x1a59   :  { %v1452_v30 = vsel %vm1449_vm6, %v1451_v25, %v1447_v22 }
0x1a5a   :  { %v1455_v23 = vmul.f32 %v1452_v30, %v1388_v6 }
0x1ab7   :  { %v1458_v28 = vpop.permute.xlu1 %1457 }
0x1ab8   :  { %v1460_v32 = vmul.f32 %v1458_v28, %v1452_v30 }
0x1aba   :  { %1462 = vrot.lane.b32.xlu2 %v1460_v32, %s2049_s19 }
0x1b14   :  { %v1463_v20 = vpop.permute.xlu2 %1462 }
0x1b15   :  { %v1465_v9 = vadd.f32 %v1463_v20, %v1455_v23  ;;  %v1601_v23 = vpop.f32.mrf.mxu2 }
0x1b17   :  { %1910 = vtanh.f32 %v1465_v9  ;;  %v2611_v37 = vsel %vm454_vm10, %v1465_v9, %v1388_v6 }
0x1b1d   :  { %v1911_v8 = vpop.eup %1910 }
0x1b1e   :  { %1468 = vrot.lane.b32.xlu0 %v1911_v8, %s2048_s18 }
0x1b90   :  { %v1469_v24 = vpop.permute.xlu0 %1468 }
0x1b91   :  { %v1471_v27 = vmul.f32 %v1469_v24, %v1452_v30  ;;  %v864_v24 = vsel %vm862_vm12, %v2499_v29, %v2496_v5 }
0x1b93   :  { %v1472_v12 = vsel %vm454_vm10, %v1471_v27, %v1387_v59 }
0x1b94   :  { %1475 = vrot.lane.b32.xlu1 %v1472_v12, %s2049_s19 }
0x1c06   :  { %v1476_v14 = vpop.permute.xlu1 %1475 }
0x1c07   :  { %1785 = vmatmul.msk.f32.vlgmr.msrb.gmra.mxu3 %vm80_vm1, %v1476_v14 }
0x1c8a   :  { %v1496_v53 = vpop.f32.mrf.mxu3 }
0x1c8b   :  { %v1517_v35 = vadd.f32 %v1516_v0, %v1496_v53 }
0x1c8d   :  { %v1519_v36 = vadd.f32 %v2483_v13, %v1517_v35 }
0x1c8f   :  { %1912 = vtanh.f32 %v1519_v36  ;;  %v1787_v26 = vmul.f32 -1.442695, %v1519_v36 }
0x1c91   :  { %1914 = vpow2.f32 %v1787_v26 }
0x1c95   :  { %v1913_v31 = vpop.eup %1912 }
0x1c96   :  { %1542 = vrot.lane.b32.xlu2 %v1913_v31, %s2048_s18 }
0x1c97   :  { %v1915_v41 = vpop.eup %1914 }
0x1c98   :  { %v1523_v42 = vadd.f32 1.0, %v1915_v41 }
0x1c9a   :  { %1916 = vrcp.f32 %v1523_v42  ;;  %v1535_v48 = vand.u32 2147483648, %v1523_v42  ;;  %vm1529_vm7 = vweird.f32 %v1523_v42  ;;  %v1533_v49 = vand.u32 2147483647, %v1523_v42 }
0x1c9b   :  { %1918 = vtanh.f32 %v921_v55 }
0x1c9c   :  { %v1536_v52 = vor.u32 1.1754944e-38, %v1535_v48  ;;  %vm1534_vm11 = vcmp.eq.f32.partialorder %v1533_v49, 8.507059e+37 }
0x1ca0   :  { %v1917_v43 = vpop.eup %1916 }
0x1ca1   :  { %v1525_v44 = vmul.f32 %v1917_v43, %v1523_v42  ;;  %vm1530_vm2 = vweird.f32 %v1917_v43  ;;  %v1919_v60 = vpop.eup %1918 }
0x1ca2   :  { %vm1531_vm8 = vmor %vm1529_vm7, %vm1530_vm2 }
0x1ca3   :  { %v1526_v45 = vsub.f32 1.0, %v1525_v44 }
0x1ca5   :  { %v1527_v46 = vmul.f32 %v1917_v43, %v1526_v45 }
0x1ca7   :  { %v1528_v47 = vadd.f32 %v1917_v43, %v1527_v46 }
0x1ca9   :  { %v1532_v51 = vsel %vm1531_vm8, %v1917_v43, %v1528_v47 }
0x1caa   :  { %v1537_v57 = vsel %vm1534_vm11, %v1536_v52, %v1532_v51 }
0x1cab   :  { %v1540_v40 = vmul.f32 %v1537_v57, %v2611_v37 }
0x1cf0   :  { %v1543_v56 = vpop.permute.xlu2 %1542 }
0x1cf1   :  { %v1545_v59 = vmul.f32 %v1543_v56, %v1537_v57 }
0x1cf3   :  { %1547 = vrot.lane.b32.xlu0 %v1545_v59, %s2049_s19  ;;  %v1657_v59 = vld [vmem:[%s2690_s9 + $0x18] sm:$0xff] }
0x1cfb   :  { %944 = vrot.lane.b32.xlu0 %v1919_v60, %s2048_s18  ;;  %v1656_v60 = vld [vmem:[%s2690_s9 + $0x10] sm:$0xff] }
0x1d65   :  { %v1548_v61 = vpop.permute.xlu0 %1547 }
0x1d66   :  { %v2614_v39 = vadd.f32 %v1548_v61, %v1540_v40 }
0x1d68   :  { %1920 = vtanh.f32 %v2614_v39  ;;  %v1558_v51 = vsel %vm352_vm15, %v2614_v39, %v2611_v37  ;;  %v1655_v37 = vld [vmem:[%s2690_s9 + $0x8] sm:$0xff] }
0x1d69   :  { %1922 = vpow2.f32 %v1767_v58 }
0x1d6d   :  { %v945_v28 = vpop.permute.xlu0 %944 }
0x1d6e   :  { %v1921_v19 = vpop.eup %1920 }
0x1d6f   :  { %1553 = vrot.lane.b32.xlu1 %v1921_v19, %s2048_s18  ;;  %v1923_v62 = vpop.eup %1922  ;;  %v1654_v19 = vld [vmem:[%s2690_s9] sm:$0xff] }
0x1d70   :  { %v925_v38 = vadd.f32 1.0, %v1923_v62 }
0x1d72   :  { %1924 = vrcp.f32 %v925_v38  ;;  %v937_v10 = vand.u32 2147483648, %v925_v38  ;;  %vm931_vm4 = vweird.f32 %v925_v38  ;;  %v935_v18 = vand.u32 2147483647, %v925_v38 }
0x1d74   :  { %v938_v25 = vor.u32 1.1754944e-38, %v937_v10  ;;  %vm936_vm13 = vcmp.eq.f32.partialorder %v935_v18, 8.507059e+37 }
0x1d78   :  { %v1925_v63 = vpop.eup %1924 }
0x1d79   :  { %v927_v7 = vmul.f32 %v1925_v63, %v925_v38  ;;  %vm932_vm10 = vweird.f32 %v1925_v63 }
0x1d7a   :  { %vm933_vm0 = vmor %vm931_vm4, %vm932_vm10 }
0x1d7b   :  { %v928_v21 = vsub.f32 1.0, %v927_v7 }
0x1d7d   :  { %v929_v1 = vmul.f32 %v1925_v63, %v928_v21 }
0x1d7f   :  { %v930_v4 = vadd.f32 %v1925_v63, %v929_v1 }
0x1d81   :  { %v934_v22 = vsel %vm933_vm0, %v1925_v63, %v930_v4 }
0x1d82   :  { %v939_v30 = vsel %vm936_vm13, %v938_v25, %v934_v22 }
0x1d83   :  { %v947_v32 = vmul.f32 %v945_v28, %v939_v30 }
0x1de1   :  { %v1554_v2 = vpop.permute.xlu1 %1553 }
0x1de2   :  { %v1556_v3 = vmul.f32 %v1554_v2, %v1537_v57  ;;  %v1661_v57 = vld [vmem:[%s2690_s9 + $0x38] sm:$0xff] }
0x1de3   :  { %1678 = vmatpush.msra.mxu3 %v1661_v57 }
0x1de4   :  { %v2620_v17 = vsel %vm352_vm15, %v1556_v3, %v1472_v12  ;;  %v942_v12 = vmul.f32 %v939_v30, %v864_v24  ;;  %vm1666_vm15 = vcmask 523264  }
0x1de5   :  { %1560 = vrot.lane.b32.xlu2 %v2620_v17, %s2049_s19 }
0x1ded   :  { %949 = vrot.lane.b32.xlu2 %v947_v32, %s2049_s19 }
0x1e3f   :  { %v1561_v6 = vpop.permute.xlu2 %1560 }
0x1e40   :  { %1788 = vmatmul.msk.f32.vlgmr.msrb.gmra.mxu1 %vm80_vm1, %v1561_v6 }
0x1e47   :  { %v950_v27 = vpop.permute.xlu2 %949 }
0x1e48   :  { %v952_v14 = vadd.f32 %v950_v27, %v942_v12 }
0x1ebd   :  { %v1581_v20 = vpop.f32.mrf.mxu1 }
0x1ebe   :  { %v1602_v9 = vadd.f32 %v1601_v23, %v1581_v20 }
0x1ec0   :  { %v1604_v8 = vadd.f32 %v2483_v13, %v1602_v9 }
0x1ec2   :  { %1926 = vtanh.f32 %v1604_v8  ;;  %v1790_v35 = vmul.f32 -1.442695, %v1604_v8 }
0x1ec3   :  { %1928 = vtanh.f32 %v952_v14 }
0x1ec4   :  { %1930 = vpow2.f32 %v1790_v35 }
0x1ec8   :  { %v1927_v0 = vpop.eup %1926 }
0x1ec9   :  { %1627 = vrot.lane.b32.xlu1 %v1927_v0, %s2048_s18  ;;  %v1929_v53 = vpop.eup %1928 }
0x1eca   :  { %v1931_v36 = vpop.eup %1930 }
0x1ecb   :  { %v1608_v13 = vadd.f32 1.0, %v1931_v36 }
0x1ecd   :  { %1932 = vrcp.f32 %v1608_v13  ;;  %v1620_v29 = vand.u32 2147483648, %v1608_v13  ;;  %vm1614_vm3 = vweird.f32 %v1608_v13  ;;  %v1618_v42 = vand.u32 2147483647, %v1608_v13 }
0x1ecf   :  { %v1621_v44 = vor.u32 1.1754944e-38, %v1620_v29  ;;  %vm1619_vm6 = vcmp.eq.f32.partialorder %v1618_v42, 8.507059e+37 }
0x1ed1   :  { %955 = vrot.lane.b32.xlu1 %v1929_v53, %s2048_s18 }
0x1ed3   :  { %v1933_v31 = vpop.eup %1932 }
0x1ed4   :  { %v1610_v26 = vmul.f32 %v1933_v31, %v1608_v13  ;;  %vm1615_vm12 = vweird.f32 %v1933_v31 }
0x1ed5   :  { %vm1616_vm5 = vmor %vm1614_vm3, %vm1615_vm12 }
0x1ed6   :  { %v1611_v41 = vsub.f32 1.0, %v1610_v26 }
0x1ed8   :  { %v1612_v11 = vmul.f32 %v1933_v31, %v1611_v41 }
0x1eda   :  { %v1613_v5 = vadd.f32 %v1933_v31, %v1612_v11 }
0x1edc   :  { %v1617_v43 = vsel %vm1616_vm5, %v1933_v31, %v1613_v5 }
0x1edd   :  { %v1622_v46 = vsel %vm1619_vm6, %v1621_v44, %v1617_v43 }
0x1ede   :  { %v1625_v52 = vmul.f32 %v1622_v46, %v1558_v51 }
0x1f3b   :  { %v1628_v45 = vpop.permute.xlu1 %1627 }
0x1f3c   :  { %v1630_v47 = vmul.f32 %v1628_v45, %v1622_v46 }
0x1f3e   :  { %1632 = vrot.lane.b32.xlu0 %v1630_v47, %s2049_s19 }
0x1f43   :  { %v956_v48 = vpop.permute.xlu1 %955 }
0x1f44   :  { %v958_v49 = vmul.f32 %v956_v48, %v939_v30 }
0x1f46   :  { %v965_v50 = vsel %vm964_vm14, %v958_v49, %v2517_v15  ;;  %v1660_v15 = vld [vmem:[%s2690_s9 + $0x30] sm:$0xff]  ;;  %vm1652_vm14 = vcmask 517120  }
0x1f47   :  { %1644 = vrot.lane.b32.xlu0 %v965_v50, %s2049_s19  ;;  %1679 = vmatpush.msra.mxu3 %v1660_v15 }
0x1f49   :  { %1680 = vmatpush.msra.mxu3 %v1659_v33 }
0x1f4b   :  { %1681 = vmatpush.msra.mxu3 %v1658_v34 }
0x1f4d   :  { %1682 = vmatpush.msra.mxu3 %v1657_v59 }
0x1f4f   :  { %1683 = vmatpush.msra.mxu3 %v1656_v60 }
0x1f51   :  { %1684 = vmatpush.msra.mxu3 %v1655_v37 }
0x1f53   :  { %1685 = vmatpush.msra.mxu3 %v1654_v19 }
0x1fb0   :  { %v1633_v54 = vpop.permute.xlu0 %1632 }
0x1fb1   :  { %v1635_v55 = vadd.f32 %v1633_v54, %v1625_v52 }
0x1fb3   :  { %1934 = vtanh.f32 %v1635_v55 }
0x1fb9   :  { %v1935_v56 = vpop.eup %1934  ;;  %v1645_v58 = vpop.permute.xlu0 %1644 }
0x1fba   :  { %1638 = vrot.lane.b32.xlu2 %v1935_v56, %s2048_s18 }
0x2014   :  { %v1639_v40 = vpop.permute.xlu2 %1638 }
0x2015   :  { %v1641_v61 = vmul.f32 %v1639_v40, %v1622_v46 }
0x2017   :  { %v1642_v39 = vsel %vm250_vm9, %v1641_v61, %v2620_v17 }
0x2018   :  { %1648 = vrot.lane.b32.xlu1 %v1642_v39, %s2048_s18 }
0x208a   :  { %v1649_v62 = vpop.permute.xlu1 %1648 }
0x208b   :  { %v1651_v38 = vsel %vm80_vm1, %v1645_v58, %v1649_v62  ;;  %vm1690_vm1 = vcmask 25600  }
0x208c   :  { %1791 = vmatmul.msk.f32.vlgmr.msra.gmra.mxu3 %vm1666_vm15, %v1651_v38  ;;  %1653 = vst.msk [vmem:[#allocation8] sm:$0x3] %vm1652_vm14, %v1651_v38 }
0x208d   :  { %1713 = dma.vmem_to_hbm [thread:$0]  %s1709_s29, 32, %s1711_s0, [#allocation9]  }
0x210f   :  { %v1687_v63 = vpop.f32.mrf.mxu3 }
0x2110   :  { %v1688_v7 = vadd.f32 %v1807_v16, %v1687_v63 }
0x2112   :  { %1691 = vst.msk [vmem:[#allocation7] sm:$0x3] %vm1690_vm1, %v1688_v7 }
0x2113   :  { %1702 = dma.vmem_to_hbm [thread:$0]  %s1698_s8, 32, %s1700_s6, [#allocation4]  }
0x2114   :  { %2038 = dma.done.wait [#allocation4], 32  }
0x2115   :  { %2039 = vsyncadd [#allocation4], 4294967264 }
0x2116   :  { %2040 = dma.done.wait [#allocation9], 32  }
0x2117   :  { %2041 = vsyncadd [#allocation9], 4294967264 }
0x2118   :  { %1722 = vsyncpa [#allocation3], 1 }
0x2119   :  { %1723 = vsyncpa [#allocation6], 1 }
0x211a   :  { %1724 = vsyncpa [#allocation4], 1 }
0x211b   :  { %1725 = vsyncpa [#allocation9], 1 }

</bundles_post_ra>
